<compile_context>
chip_gen: v7x
topology: tpu7x:2x2x1
jax: 0.10.0
libtpu: 0.0.40
codegen_flags: <defaults>
</compile_context>

<pallas_src>
import functools

import jax
import jax.numpy as jnp
from jax.experimental import pallas as pl
from jax.experimental.pallas import tpu as pltpu


NEG_BIG = -1e9  # additive mask bias for padded keys (uniform attn if all-pad,
                # whereas torch's -inf key_padding_mask would yield NaN)


# ----------------------------------------------------------------------------
# Shared math
# ----------------------------------------------------------------------------
def _layernorm(x, gamma, beta, eps=1e-5):
    mu = jnp.mean(x, axis=-1, keepdims=True)
    xc = x - mu
    var = jnp.mean(xc * xc, axis=-1, keepdims=True)
    return xc * jax.lax.rsqrt(var + eps) * gamma + beta


# ----------------------------------------------------------------------------
# Kernel
# ----------------------------------------------------------------------------
def fused_encoder_kernel(x0_ref, bias_ref,
                         wqkv_ref, bqkv_ref, wo_ref, bo_ref,
                         g1_ref, b1_ref,
                         w1_ref, bf1_ref, w2_ref, bf2_ref,
                         g2_ref, b2_ref,
                         out_ref, ctx_scr,
                         *, num_head, tb, seq, softmax_dtype):
    """One grid step = (batch tile bi, layer l).  The f32 activation is carried
    in out_ref (resident in VMEM across the inner, sequential layer axis)."""
    l = pl.program_id(1)
    n_layers = pl.num_programs(1)

    d_model = out_ref.shape[-1]
    d_head = d_model // num_head
    rows = tb * seq

    @pl.when(l == 0)
    def _():
        # x0 arrives as bf16 (halved DMA bytes); promote once for the carry.
        out_ref[...] = x0_ref[...].astype(jnp.float32)

    x = out_ref[...].reshape(rows, d_model)          # (rows, D) f32 carry
    bias = bias_ref[...]                             # (tb, 1, S) f32: 0 / -1e9

    # ---- QKV projection: one (rows, D) @ (D, 3D) bf16 matmul -----------------
    # (1/sqrt(d_head) is pre-folded into the Q columns of wqkv/bqkv.)
    qkv = jnp.dot(x.astype(jnp.bfloat16), wqkv_ref[0],
                  preferred_element_type=jnp.float32) + bqkv_ref[0]
    qkv = qkv.reshape(tb, seq, 3 * d_model).astype(jnp.bfloat16)

    # ---- multi-head self-attention (batched over the tb sequences) -----------
    for h in range(num_head):                        # short static loop
        lo = h * d_head
        q_h = qkv[:, :, lo:lo + d_head]
        k_h = qkv[:, :, d_model + lo:d_model + lo + d_head]
        v_h = qkv[:, :, 2 * d_model + lo:2 * d_model + lo + d_head]

        s = jnp.einsum('bqd,bkd->bqk', q_h, k_h,
                       preferred_element_type=jnp.float32) + bias
        m = jnp.max(s, axis=-1, keepdims=True)
        p = jnp.exp((s - m).astype(softmax_dtype))           # bf16 EUP on v6e/v7x
        denom = jnp.sum(p, axis=-1, keepdims=True).astype(jnp.float32)
        ctx = jnp.einsum('bqk,bkd->bqd', p.astype(jnp.bfloat16), v_h,
                         preferred_element_type=jnp.float32)  # (tb, S, dh)
        # normalize the small (tb,S,dh) context, not the (tb,S,S) probs
        ctx = ctx * pl.reciprocal(denom, approx=True)
        # stash this head's context at its lane slice; out-proj is fused below
        ctx_scr[:, lo:lo + d_head] = ctx.reshape(rows, d_head).astype(jnp.bfloat16)

    # ---- output projection: ONE full-K (rows, D) @ (D, D) matmul -------------
    attn = jnp.dot(ctx_scr[...], wo_ref[0],
                   preferred_element_type=jnp.float32) + bo_ref[0]

    # ---- add & norm -----------------------------------------------------------
    h1 = _layernorm(x + attn, g1_ref[0], b1_ref[0])

    # ---- feed-forward ---------------------------------------------------------
    ff = jnp.dot(h1.astype(jnp.bfloat16), w1_ref[0],
                 preferred_element_type=jnp.float32) + bf1_ref[0]
    ff = jnp.maximum(ff, 0.0)
    ff = jnp.dot(ff.astype(jnp.bfloat16), w2_ref[0],
                 preferred_element_type=jnp.float32) + bf2_ref[0]

    x_new = _layernorm(h1 + ff, g2_ref[0], b2_ref[0])
    # write the carry back; at l == L-1 this block is what Pallas flushes to HBM
    out_ref[...] = x_new.reshape(tb, seq, d_model)


# ----------------------------------------------------------------------------
# Generation-aware sizing helpers
# ----------------------------------------------------------------------------
def _tpu_generation():
    """Best-effort hardware query: (vmem_capacity_bytes, is_two_tc_chip, kind)."""
    vmem = 128 * 1024 * 1024
    try:
        vmem = int(pltpu.get_tpu_info().vmem_capacity_bytes)
    except Exception:
        pass
    kind = ''
    try:
        kind = jax.devices()[0].device_kind.lower()
    except Exception:
        pass
    two_tc = 'v7' in kind            # v7x-class: 2 TensorCores share the chip
    return vmem, two_tc, kind


def _softmax_exp_dtype(kind):
    """bf16 EUP exists on v6e/v7x; keep f32 exp on v5e and older / unknown."""
    if 'v6' in kind or 'v7' in kind:
        return jnp.bfloat16
    return jnp.float32


def _vmem_limit_bytes(vmem_cap):
    """Raise the scoped-VMEM limit above the small defaults (16/32 MiB)."""
    return max(32 * 1024 * 1024, int(vmem_cap * 3 // 4))


def _choose_batch_tile(batch, seq, d_model, ff_dim, vmem_budget_bytes,
                       prefer_two_steps, target_rows=1024):
    """Largest divisor of `batch` with rows = tile*seq <= target_rows (512-1024
    keeps the kernel past the weight-HBM roofline on v6e/v7x since the layer
    axis is innermost and weights are re-streamed per batch tile) and an
    estimated VMEM footprint within budget.  The ">=2 parallel steps"
    constraint is applied only on 2-TensorCore (v7x-class) chips."""
    # double-buffered bf16 weights (independent of the tile size)
    w_bytes = 2 * 2 * (3 * d_model * d_model + d_model * d_model
                       + 2 * d_model * ff_dim)

    def est(tile):
        rows = tile * seq
        act = rows * (2 * 2 * d_model        # x0 bf16, double buffered
                      + 2 * 4 * d_model      # out f32 (carry), double buffered
                      + 2 * d_model          # ctx scratch bf16
                      + 12 * d_model         # qkv f32 temp
                      + 4 * ff_dim           # ff f32 temp
                      + 8 * d_model)         # misc f32 temps (h1, attn, ...)
        act += tile * seq * seq * 4 * 2      # per-head scores / probs (f32)
        act += tile * seq * 4 * 2            # additive key-pad bias
        return w_bytes + act

    best = 1
    for tile in range(1, batch + 1):
        if batch % tile:
            continue
        if tile > 1 and tile * seq > target_rows:
            continue
        if tile > 1 and est(tile) > vmem_budget_bytes:
            continue
        if prefer_two_steps and batch >= 2 and batch // tile < 2:
            continue
        best = max(best, tile)
    return best


# ----------------------------------------------------------------------------
# Parameter stacking (layer-leading axis, bf16 matmul weights, folded scale)
# ----------------------------------------------------------------------------
def _stack_layer_params(layers, d_model, num_head):
    scale = 1.0 / float(d_model // num_head) ** 0.5

    def fold_q(m):  # fold 1/sqrt(d_head) into the Q third of the last axis
        return m.at[..., :d_model].multiply(scale)

    def stk(name, dtype, transform=None):
        mats = [lp[name] if transform is None else transform(lp[name])
                for lp in layers]
        return jnp.stack(mats).astype(dtype)

    return dict(
        wqkv=stk('wqkv', jnp.bfloat16, fold_q), bqkv=stk('bqkv', jnp.float32, fold_q),
        wo=stk('wo', jnp.bfloat16), bo=stk('bo', jnp.float32),
        ln1_g=stk('ln1_g', jnp.float32), ln1_b=stk('ln1_b', jnp.float32),
        w1=stk('w1', jnp.bfloat16), b1=stk('b1', jnp.float32),
        w2=stk('w2', jnp.bfloat16), b2=stk('b2', jnp.float32),
        ln2_g=stk('ln2_g', jnp.float32), ln2_b=stk('ln2_b', jnp.float32),
    )


# ----------------------------------------------------------------------------
# Wrapper
# ----------------------------------------------------------------------------
def posemb_transformer_encoder(tokens, params, *, num_head):
    B, S = tokens.shape
    D = params['embedding'].shape[1]
    F = params['layers'][0]['w1'].shape[1]
    L = len(params['layers'])
    assert D % num_head == 0, "model_dim must be divisible by num_head"

    # ---- embedding gather + pos emb + pad fill (elementwise glue, XLA-fused) --
    pad = (tokens == 0)
    x0 = jnp.take(params['embedding'], tokens, axis=0) \
        + params['pos_embedding'][:S][None]
    x0 = jnp.where(pad[:, :, None], 0.0, x0).astype(jnp.bfloat16)         # (B,S,D)
    bias = jnp.where(pad, NEG_BIG, 0.0).astype(jnp.float32)[:, None, :]   # (B,1,S)

    w = _stack_layer_params(params['layers'], D, num_head)

    vmem_cap, two_tc, kind = _tpu_generation()
    vmem_limit = _vmem_limit_bytes(vmem_cap)
    softmax_dtype = _softmax_exp_dtype(kind)

    tb = _choose_batch_tile(B, S, D, F, int(vmem_limit * 0.9),
                            prefer_two_steps=two_tc)
    grid = (B // tb, L)

    # If double-buffered FFN weights alone would dominate the scoped VMEM
    # (realistic D on v7x's 64 MiB), fall back to single-buffering w1/w2.
    ffn_weight_2buf = 2 * 2 * 2 * D * F
    single_buffer_ffn = ffn_weight_2buf > vmem_limit // 2

    def xmap(bi, l):      # activation / mask / output blocks: follow batch tile
        return (bi, 0, 0)

    def wmap(bi, l):      # stacked weights: follow the layer axis
        return (l, 0, 0)

    def wspec(shape):
        return pl.BlockSpec(shape, wmap)

    def ffn_wspec(shape):
        if single_buffer_ffn:
            return pl.BlockSpec(shape, wmap, pipeline_mode=pl.Buffered(1))
        return pl.BlockSpec(shape, wmap)

    kernel = functools.partial(fused_encoder_kernel,
                               num_head=num_head, tb=tb, seq=S,
                               softmax_dtype=softmax_dtype)

    out = pl.pallas_call(
        kernel,
        out_shape=jax.ShapeDtypeStruct((B, S, D), jnp.float32),
        grid_spec=pltpu.PrefetchScalarGridSpec(
            num_scalar_prefetch=0,
            grid=grid,
            in_specs=[
                pl.BlockSpec((tb, S, D), xmap),        # x0 (bf16)
                pl.BlockSpec((tb, 1, S), xmap),        # additive key-pad bias
                wspec((1, D, 3 * D)),                  # wqkv (bf16, Q-scaled)
                wspec((1, 1, 3 * D)),                  # bqkv
                wspec((1, D, D)),                      # wo   (bf16)
                wspec((1, 1, D)),                      # bo
                wspec((1, 1, D)),                      # ln1 gamma
                wspec((1, 1, D)),                      # ln1 beta
                ffn_wspec((1, D, F)),                  # w1   (bf16)
                wspec((1, 1, F)),                      # b1
                ffn_wspec((1, F, D)),                  # w2   (bf16)
                wspec((1, 1, D)),                      # b2
                wspec((1, 1, D)),                      # ln2 gamma
                wspec((1, 1, D)),                      # ln2 beta
            ],
            out_specs=pl.BlockSpec((tb, S, D), xmap),
            scratch_shapes=[pltpu.VMEM((tb * S, D), jnp.bfloat16)],  # per-head ctx
        ),
        compiler_params=pltpu.CompilerParams(
            dimension_semantics=("parallel", "arbitrary"),
            vmem_limit_bytes=vmem_limit,
        ),
    )(x0, bias,
      w['wqkv'], w['bqkv'], w['wo'], w['bo'],
      w['ln1_g'], w['ln1_b'],
      w['w1'], w['b1'], w['w2'], w['b2'],
      w['ln2_g'], w['ln2_b'])
    return out


# ----------------------------------------------------------------------------
# Pure-JAX f32 reference (for tolerance validation)
# ----------------------------------------------------------------------------
def reference_forward(tokens, params, *, num_head):
    B, S = tokens.shape
    D = params['embedding'].shape[1]
    dh = D // num_head
    pad = tokens == 0
    x = jnp.take(params['embedding'], tokens, axis=0) + params['pos_embedding'][:S][None]
    x = jnp.where(pad[:, :, None], 0.0, x)
    bias = jnp.where(pad, NEG_BIG, 0.0)[:, None, None, :]

    def split(t):
        return t.reshape(B, S, num_head, dh).transpose(0, 2, 1, 3)

    for lp in params['layers']:
        qkv = x @ lp['wqkv'] + lp['bqkv'][0]
        q, k, v = split(qkv[..., :D]), split(qkv[..., D:2 * D]), split(qkv[..., 2 * D:])
        s = jnp.einsum('bhqd,bhkd->bhqk', q, k) / jnp.sqrt(dh) + bias
        p = jax.nn.softmax(s, axis=-1)
        ctx = jnp.einsum('bhqk,bhkd->bhqd', p, v).transpose(0, 2, 1, 3).reshape(B, S, D)
        attn = ctx @ lp['wo'] + lp['bo'][0]
        h1 = _layernorm(x + attn, lp['ln1_g'][0], lp['ln1_b'][0])
        ff = jax.nn.relu(h1 @ lp['w1'] + lp['b1'][0]) @ lp['w2'] + lp['b2'][0]
        x = _layernorm(h1 + ff, lp['ln2_g'][0], lp['ln2_b'][0])
    return x


# ----------------------------------------------------------------------------
# Deterministic parameter init (synthetic, no checkpoint)
# ----------------------------------------------------------------------------
def init_params(key, vocab_size, emb_dim, model_dim, ff_dim, num_layers,
                max_sent_length=1000, padding_idx=0):
    assert emb_dim == model_dim, "forward requires emb_dim == model_dim"
    keys = jax.random.split(key, 2 + num_layers)

    emb = 0.02 * jax.random.normal(keys[0], (vocab_size, emb_dim), jnp.float32)
    emb = emb.at[padding_idx].set(0.0)               # padding_idx row is zero
    pos = 0.02 * jax.random.normal(keys[1], (max_sent_length, emb_dim), jnp.float32)

    layers = []
    for li in range(num_layers):
        lk = jax.random.split(keys[2 + li], 6)
        D, F = model_dim, ff_dim
        layers.append(dict(
            wqkv=0.05 * jax.random.normal(lk[0], (D, 3 * D), jnp.float32),
            bqkv=jnp.zeros((1, 3 * D), jnp.float32),
            wo=0.05 * jax.random.normal(lk[1], (D, D), jnp.float32),
            bo=jnp.zeros((1, D), jnp.float32),
            ln1_g=jnp.ones((1, D), jnp.float32),
            ln1_b=jnp.zeros((1, D), jnp.float32),
            w1=0.05 * jax.random.normal(lk[2], (D, F), jnp.float32),
            b1=jnp.zeros((1, F), jnp.float32),
            w2=0.05 * jax.random.normal(lk[3], (F, D), jnp.float32),
            b2=jnp.zeros((1, D), jnp.float32),
            ln2_g=jnp.ones((1, D), jnp.float32),
            ln2_b=jnp.zeros((1, D), jnp.float32),
        ))
    return dict(embedding=emb, pos_embedding=pos, layers=layers)


# ----------------------------------------------------------------------------
if __name__ == "__main__":
    VOCAB, EMB, MODEL, FF = 50, 32, 32, 64
    NUM_LAYERS, NUM_HEAD = 2, 4
    B, S = 2, 8

    key = jax.random.PRNGKey(0)
    pkey, tkey = jax.random.split(key)
    params = init_params(pkey, VOCAB, EMB, MODEL, FF, NUM_LAYERS)

    tokens = jax.random.randint(tkey, (B, S), 0, VOCAB, dtype=jnp.int32)
    # force some padding tokens (id 0) so the mask path is exercised
    tokens = tokens.at[0, S - 2:].set(0)
    tokens = tokens.at[1, S - 1:].set(0)

    out = posemb_transformer_encoder(tokens, params, num_head=NUM_HEAD)
    out = jax.block_until_ready(out)
    assert out.shape == (B, S, MODEL)
    assert bool(jnp.all(jnp.isfinite(out)))

    # validate against the f32 reference with a tolerance (bf16 matmuls +
    # approximate softmax reciprocal introduce small drift)
    ref = reference_forward(tokens, params, num_head=NUM_HEAD)
    err = float(jnp.max(jnp.abs(out - ref)))
    assert err < 1e-1, f"kernel deviates from f32 reference: max|diff|={err}"

    print("KERNEL_OK")
</pallas_src>

<mosaic_0001>
module attributes {stable_mosaic.version = 11 : i64} {
  func.func @fused_encoder_kernel(%arg0: i32, %arg1: i32, %arg2: memref<2x8x32xbf16, #tpu.memory_space<vmem>>, %arg3: memref<2x1x8xf32, #tpu.memory_space<vmem>>, %arg4: memref<1x32x96xbf16, #tpu.memory_space<vmem>>, %arg5: memref<1x1x96xf32, #tpu.memory_space<vmem>>, %arg6: memref<1x32x32xbf16, #tpu.memory_space<vmem>>, %arg7: memref<1x1x32xf32, #tpu.memory_space<vmem>>, %arg8: memref<1x1x32xf32, #tpu.memory_space<vmem>>, %arg9: memref<1x1x32xf32, #tpu.memory_space<vmem>>, %arg10: memref<1x32x64xbf16, #tpu.memory_space<vmem>>, %arg11: memref<1x1x64xf32, #tpu.memory_space<vmem>>, %arg12: memref<1x64x32xbf16, #tpu.memory_space<vmem>>, %arg13: memref<1x1x32xf32, #tpu.memory_space<vmem>>, %arg14: memref<1x1x32xf32, #tpu.memory_space<vmem>>, %arg15: memref<1x1x32xf32, #tpu.memory_space<vmem>>, %arg16: memref<2x8x32xf32, #tpu.memory_space<vmem>>, %arg17: memref<16x32xbf16, #tpu.memory_space<vmem>>) attributes {dimension_semantics = [#tpu.dimension_semantics<parallel>, #tpu.dimension_semantics<arbitrary>], iteration_bounds = array<i64: 1, 2>, scalar_prefetch = 0 : i64, scratch_operands = 1 : i64, tpu.core_type = #tpu.core_type<tc>, window_params = [{transform_indices = @transform_0, window_bounds = array<i64: 2, 8, 32>}, {transform_indices = @transform_1, window_bounds = array<i64: 2, 1, 8>}, {transform_indices = @transform_2, window_bounds = array<i64: 1, 32, 96>}, {transform_indices = @transform_3, window_bounds = array<i64: 1, 1, 96>}, {transform_indices = @transform_4, window_bounds = array<i64: 1, 32, 32>}, {transform_indices = @transform_5, window_bounds = array<i64: 1, 1, 32>}, {transform_indices = @transform_6, window_bounds = array<i64: 1, 1, 32>}, {transform_indices = @transform_7, window_bounds = array<i64: 1, 1, 32>}, {transform_indices = @transform_8, window_bounds = array<i64: 1, 32, 64>}, {transform_indices = @transform_9, window_bounds = array<i64: 1, 1, 64>}, {transform_indices = @transform_10, window_bounds = array<i64: 1, 64, 32>}, {transform_indices = @transform_11, window_bounds = array<i64: 1, 1, 32>}, {transform_indices = @transform_12, window_bounds = array<i64: 1, 1, 32>}, {transform_indices = @transform_13, window_bounds = array<i64: 1, 1, 32>}, {transform_indices = @transform_14, window_bounds = array<i64: 2, 8, 32>}]} {
    %c0_i32 = arith.constant 0 : i32
    %0 = arith.cmpi eq, %arg1, %c0_i32 : i32
    %1 = arith.extui %0 : i1 to i32
    %c0_i32_0 = arith.constant 0 : i32
    %2 = arith.cmpi ne, %1, %c0_i32_0 : i32
    scf.if %2 {
      %c0_82 = arith.constant 0 : index
      %c0_83 = arith.constant 0 : index
      %c0_84 = arith.constant 0 : index
      %178 = vector.load %arg2[%c0_82, %c0_83, %c0_84] : memref<2x8x32xbf16, #tpu.memory_space<vmem>>, vector<2x8x32xbf16>
      %179 = arith.extf %178 : vector<2x8x32xbf16> to vector<2x8x32xf32>
      %c0_85 = arith.constant 0 : index
      %c0_86 = arith.constant 0 : index
      %c0_87 = arith.constant 0 : index
      %180 = vector.load %arg16[%c0_85, %c0_86, %c0_87] : memref<2x8x32xf32, #tpu.memory_space<vmem>>, vector<2x8x32xf32>
      tpu.vector_store %arg16[%c0_85, %c0_86, %c0_87], %179 {strides = array<i32>} : memref<2x8x32xf32, #tpu.memory_space<vmem>>, vector<2x8x32xf32>,
    } else {
    }
    %c0 = arith.constant 0 : index
    %c0_1 = arith.constant 0 : index
    %c0_2 = arith.constant 0 : index
    %3 = vector.load %arg16[%c0, %c0_1, %c0_2] : memref<2x8x32xf32, #tpu.memory_space<vmem>>, vector<2x8x32xf32>
    %4 = vector.shape_cast %3 : vector<2x8x32xf32> to vector<16x32xf32>
    %c0_3 = arith.constant 0 : index
    %c0_4 = arith.constant 0 : index
    %c0_5 = arith.constant 0 : index
    %5 = vector.load %arg3[%c0_3, %c0_4, %c0_5] : memref<2x1x8xf32, #tpu.memory_space<vmem>>, vector<2x1x8xf32>
    %6 = arith.truncf %4 : vector<16x32xf32> to vector<16x32xbf16>
    %c0_6 = arith.constant 0 : index
    %c0_7 = arith.constant 0 : index
    %c0_8 = arith.constant 0 : index
    %7 = vector.load %arg4[%c0_6, %c0_7, %c0_8] : memref<1x32x96xbf16, #tpu.memory_space<vmem>>, vector<1x32x96xbf16>
    %8 = vector.shape_cast %7 : vector<1x32x96xbf16> to vector<32x96xbf16>
    %cst = arith.constant dense<0.000000e+00> : vector<16x96xf32>
    %9 = tpu.matmul %6, %8, %cst {dimension_numbers = #tpu.dot_dimension_numbers<[1], [0], [0], [1], [0, 0, 1, 1], [], []>} : vector<16x32xbf16>, vector<32x96xbf16>, vector<16x96xf32> -> vector<16x96xf32>
    %c0_9 = arith.constant 0 : index
    %c0_10 = arith.constant 0 : index
    %c0_11 = arith.constant 0 : index
    %10 = vector.load %arg5[%c0_9, %c0_10, %c0_11] : memref<1x1x96xf32, #tpu.memory_space<vmem>>, vector<1x1x96xf32>
    %11 = vector.shape_cast %10 : vector<1x1x96xf32> to vector<1x96xf32>
    %12 = vector.broadcast %11 : vector<1x96xf32> to vector<16x96xf32>
    %13 = arith.addf %9, %12 : vector<16x96xf32>
    %14 = vector.shape_cast %13 : vector<16x96xf32> to vector<2x8x96xf32>
    %15 = arith.truncf %14 : vector<2x8x96xf32> to vector<2x8x96xbf16>
    %16 = vector.extract_strided_slice %15 {offsets = [0, 0, 0], sizes = [2, 8, 8], strides = [1, 1, 1]} : vector<2x8x96xbf16> to vector<2x8x8xbf16>
    %17 = vector.extract_strided_slice %15 {offsets = [0, 0, 32], sizes = [2, 8, 8], strides = [1, 1, 1]} : vector<2x8x96xbf16> to vector<2x8x8xbf16>
    %18 = vector.extract_strided_slice %15 {offsets = [0, 0, 64], sizes = [2, 8, 8], strides = [1, 1, 1]} : vector<2x8x96xbf16> to vector<2x8x8xbf16>
    "tpu.trace_start"() <{level = 10 : i32, message = "bqd,bkd->bqk"}> : () -> ()
    %cst_12 = arith.constant dense<0.000000e+00> : vector<2x8x8xf32>
    %19 = tpu.matmul %16, %17, %cst_12 {dimension_numbers = #tpu.dot_dimension_numbers<[2], [2], [1], [1], [0, 0, 0, 1, 1, 1], [0], [0]>} : vector<2x8x8xbf16>, vector<2x8x8xbf16>, vector<2x8x8xf32> -> vector<2x8x8xf32>
    "tpu.trace_stop"() : () -> ()
    %20 = vector.broadcast %5 : vector<2x1x8xf32> to vector<2x8x8xf32>
    %21 = arith.addf %19, %20 : vector<2x8x8xf32>
    %cst_13 = arith.constant dense<0xFF800000> : vector<2x8xf32>
    %22 = vector.multi_reduction <maximumf>, %21, %cst_13 [2] : vector<2x8x8xf32> to vector<2x8xf32>
    %23 = vector.shape_cast %22 : vector<2x8xf32> to vector<2x8x1xf32>
    %24 = vector.broadcast %23 : vector<2x8x1xf32> to vector<2x8x8xf32>
    %25 = arith.subf %21, %24 : vector<2x8x8xf32>
    %26 = math.exp %25 : vector<2x8x8xf32>
    %cst_14 = arith.constant dense<0.000000e+00> : vector<2x8xf32>
    %27 = vector.multi_reduction <add>, %26, %cst_14 [2] : vector<2x8x8xf32> to vector<2x8xf32>
    %28 = vector.shape_cast %27 : vector<2x8xf32> to vector<2x8x1xf32>
    %29 = arith.truncf %26 : vector<2x8x8xf32> to vector<2x8x8xbf16>
    "tpu.trace_start"() <{level = 10 : i32, message = "bqk,bkd->bqd"}> : () -> ()
    %cst_15 = arith.constant dense<0.000000e+00> : vector<2x8x8xf32>
    %30 = tpu.matmul %29, %18, %cst_15 {dimension_numbers = #tpu.dot_dimension_numbers<[2], [1], [1], [2], [0, 0, 0, 1, 1, 2], [0], [0]>} : vector<2x8x8xbf16>, vector<2x8x8xbf16>, vector<2x8x8xf32> -> vector<2x8x8xf32>
    "tpu.trace_stop"() : () -> ()
    %31 = tpu.reciprocal %28 {approx = true} : vector<2x8x1xf32> -> vector<2x8x1xf32>
    %32 = vector.broadcast %31 : vector<2x8x1xf32> to vector<2x8x8xf32>
    %33 = arith.mulf %30, %32 : vector<2x8x8xf32>
    %34 = vector.shape_cast %33 : vector<2x8x8xf32> to vector<16x8xf32>
    %35 = arith.truncf %34 : vector<16x8xf32> to vector<16x8xbf16>
    %c0_16 = arith.constant 0 : index
    %c0_17 = arith.constant 0 : index
    %36 = vector.load %arg17[%c0_16, %c0_17] : memref<16x32xbf16, #tpu.memory_space<vmem>>, vector<16x8xbf16>
    tpu.vector_store %arg17[%c0_16, %c0_17], %35 {strides = array<i32>} : memref<16x32xbf16, #tpu.memory_space<vmem>>, vector<16x8xbf16>,
    %37 = vector.extract_strided_slice %15 {offsets = [0, 0, 8], sizes = [2, 8, 8], strides = [1, 1, 1]} : vector<2x8x96xbf16> to vector<2x8x8xbf16>
    %38 = vector.extract_strided_slice %15 {offsets = [0, 0, 40], sizes = [2, 8, 8], strides = [1, 1, 1]} : vector<2x8x96xbf16> to vector<2x8x8xbf16>
    %39 = vector.extract_strided_slice %15 {offsets = [0, 0, 72], sizes = [2, 8, 8], strides = [1, 1, 1]} : vector<2x8x96xbf16> to vector<2x8x8xbf16>
    "tpu.trace_start"() <{level = 10 : i32, message = "bqd,bkd->bqk"}> : () -> ()
    %cst_18 = arith.constant dense<0.000000e+00> : vector<2x8x8xf32>
    %40 = tpu.matmul %37, %38, %cst_18 {dimension_numbers = #tpu.dot_dimension_numbers<[2], [2], [1], [1], [0, 0, 0, 1, 1, 1], [0], [0]>} : vector<2x8x8xbf16>, vector<2x8x8xbf16>, vector<2x8x8xf32> -> vector<2x8x8xf32>
    "tpu.trace_stop"() : () -> ()
    %41 = vector.broadcast %5 : vector<2x1x8xf32> to vector<2x8x8xf32>
    %42 = arith.addf %40, %41 : vector<2x8x8xf32>
    %cst_19 = arith.constant dense<0xFF800000> : vector<2x8xf32>
    %43 = vector.multi_reduction <maximumf>, %42, %cst_19 [2] : vector<2x8x8xf32> to vector<2x8xf32>
    %44 = vector.shape_cast %43 : vector<2x8xf32> to vector<2x8x1xf32>
    %45 = vector.broadcast %44 : vector<2x8x1xf32> to vector<2x8x8xf32>
    %46 = arith.subf %42, %45 : vector<2x8x8xf32>
    %47 = math.exp %46 : vector<2x8x8xf32>
    %cst_20 = arith.constant dense<0.000000e+00> : vector<2x8xf32>
    %48 = vector.multi_reduction <add>, %47, %cst_20 [2] : vector<2x8x8xf32> to vector<2x8xf32>
    %49 = vector.shape_cast %48 : vector<2x8xf32> to vector<2x8x1xf32>
    %50 = arith.truncf %47 : vector<2x8x8xf32> to vector<2x8x8xbf16>
    "tpu.trace_start"() <{level = 10 : i32, message = "bqk,bkd->bqd"}> : () -> ()
    %cst_21 = arith.constant dense<0.000000e+00> : vector<2x8x8xf32>
    %51 = tpu.matmul %50, %39, %cst_21 {dimension_numbers = #tpu.dot_dimension_numbers<[2], [1], [1], [2], [0, 0, 0, 1, 1, 2], [0], [0]>} : vector<2x8x8xbf16>, vector<2x8x8xbf16>, vector<2x8x8xf32> -> vector<2x8x8xf32>
    "tpu.trace_stop"() : () -> ()
    %52 = tpu.reciprocal %49 {approx = true} : vector<2x8x1xf32> -> vector<2x8x1xf32>
    %53 = vector.broadcast %52 : vector<2x8x1xf32> to vector<2x8x8xf32>
    %54 = arith.mulf %51, %53 : vector<2x8x8xf32>
    %55 = vector.shape_cast %54 : vector<2x8x8xf32> to vector<16x8xf32>
    %56 = arith.truncf %55 : vector<16x8xf32> to vector<16x8xbf16>
    %c0_22 = arith.constant 0 : index
    %c8 = arith.constant 8 : index
    %57 = vector.load %arg17[%c0_22, %c8] : memref<16x32xbf16, #tpu.memory_space<vmem>>, vector<16x8xbf16>
    tpu.vector_store %arg17[%c0_22, %c8], %56 {strides = array<i32>} : memref<16x32xbf16, #tpu.memory_space<vmem>>, vector<16x8xbf16>,
    %58 = vector.extract_strided_slice %15 {offsets = [0, 0, 16], sizes = [2, 8, 8], strides = [1, 1, 1]} : vector<2x8x96xbf16> to vector<2x8x8xbf16>
    %59 = vector.extract_strided_slice %15 {offsets = [0, 0, 48], sizes = [2, 8, 8], strides = [1, 1, 1]} : vector<2x8x96xbf16> to vector<2x8x8xbf16>
    %60 = vector.extract_strided_slice %15 {offsets = [0, 0, 80], sizes = [2, 8, 8], strides = [1, 1, 1]} : vector<2x8x96xbf16> to vector<2x8x8xbf16>
    "tpu.trace_start"() <{level = 10 : i32, message = "bqd,bkd->bqk"}> : () -> ()
    %cst_23 = arith.constant dense<0.000000e+00> : vector<2x8x8xf32>
    %61 = tpu.matmul %58, %59, %cst_23 {dimension_numbers = #tpu.dot_dimension_numbers<[2], [2], [1], [1], [0, 0, 0, 1, 1, 1], [0], [0]>} : vector<2x8x8xbf16>, vector<2x8x8xbf16>, vector<2x8x8xf32> -> vector<2x8x8xf32>
    "tpu.trace_stop"() : () -> ()
    %62 = vector.broadcast %5 : vector<2x1x8xf32> to vector<2x8x8xf32>
    %63 = arith.addf %61, %62 : vector<2x8x8xf32>
    %cst_24 = arith.constant dense<0xFF800000> : vector<2x8xf32>
    %64 = vector.multi_reduction <maximumf>, %63, %cst_24 [2] : vector<2x8x8xf32> to vector<2x8xf32>
    %65 = vector.shape_cast %64 : vector<2x8xf32> to vector<2x8x1xf32>
    %66 = vector.broadcast %65 : vector<2x8x1xf32> to vector<2x8x8xf32>
    %67 = arith.subf %63, %66 : vector<2x8x8xf32>
    %68 = math.exp %67 : vector<2x8x8xf32>
    %cst_25 = arith.constant dense<0.000000e+00> : vector<2x8xf32>
    %69 = vector.multi_reduction <add>, %68, %cst_25 [2] : vector<2x8x8xf32> to vector<2x8xf32>
    %70 = vector.shape_cast %69 : vector<2x8xf32> to vector<2x8x1xf32>
    %71 = arith.truncf %68 : vector<2x8x8xf32> to vector<2x8x8xbf16>
    "tpu.trace_start"() <{level = 10 : i32, message = "bqk,bkd->bqd"}> : () -> ()
    %cst_26 = arith.constant dense<0.000000e+00> : vector<2x8x8xf32>
    %72 = tpu.matmul %71, %60, %cst_26 {dimension_numbers = #tpu.dot_dimension_numbers<[2], [1], [1], [2], [0, 0, 0, 1, 1, 2], [0], [0]>} : vector<2x8x8xbf16>, vector<2x8x8xbf16>, vector<2x8x8xf32> -> vector<2x8x8xf32>
    "tpu.trace_stop"() : () -> ()
    %73 = tpu.reciprocal %70 {approx = true} : vector<2x8x1xf32> -> vector<2x8x1xf32>
    %74 = vector.broadcast %73 : vector<2x8x1xf32> to vector<2x8x8xf32>
    %75 = arith.mulf %72, %74 : vector<2x8x8xf32>
    %76 = vector.shape_cast %75 : vector<2x8x8xf32> to vector<16x8xf32>
    %77 = arith.truncf %76 : vector<16x8xf32> to vector<16x8xbf16>
    %c0_27 = arith.constant 0 : index
    %c16 = arith.constant 16 : index
    %78 = vector.load %arg17[%c0_27, %c16] : memref<16x32xbf16, #tpu.memory_space<vmem>>, vector<16x8xbf16>
    tpu.vector_store %arg17[%c0_27, %c16], %77 {strides = array<i32>} : memref<16x32xbf16, #tpu.memory_space<vmem>>, vector<16x8xbf16>,
    %79 = vector.extract_strided_slice %15 {offsets = [0, 0, 24], sizes = [2, 8, 8], strides = [1, 1, 1]} : vector<2x8x96xbf16> to vector<2x8x8xbf16>
    %80 = vector.extract_strided_slice %15 {offsets = [0, 0, 56], sizes = [2, 8, 8], strides = [1, 1, 1]} : vector<2x8x96xbf16> to vector<2x8x8xbf16>
    %81 = vector.extract_strided_slice %15 {offsets = [0, 0, 88], sizes = [2, 8, 8], strides = [1, 1, 1]} : vector<2x8x96xbf16> to vector<2x8x8xbf16>
    "tpu.trace_start"() <{level = 10 : i32, message = "bqd,bkd->bqk"}> : () -> ()
    %cst_28 = arith.constant dense<0.000000e+00> : vector<2x8x8xf32>
    %82 = tpu.matmul %79, %80, %cst_28 {dimension_numbers = #tpu.dot_dimension_numbers<[2], [2], [1], [1], [0, 0, 0, 1, 1, 1], [0], [0]>} : vector<2x8x8xbf16>, vector<2x8x8xbf16>, vector<2x8x8xf32> -> vector<2x8x8xf32>
    "tpu.trace_stop"() : () -> ()
    %83 = vector.broadcast %5 : vector<2x1x8xf32> to vector<2x8x8xf32>
    %84 = arith.addf %82, %83 : vector<2x8x8xf32>
    %cst_29 = arith.constant dense<0xFF800000> : vector<2x8xf32>
    %85 = vector.multi_reduction <maximumf>, %84, %cst_29 [2] : vector<2x8x8xf32> to vector<2x8xf32>
    %86 = vector.shape_cast %85 : vector<2x8xf32> to vector<2x8x1xf32>
    %87 = vector.broadcast %86 : vector<2x8x1xf32> to vector<2x8x8xf32>
    %88 = arith.subf %84, %87 : vector<2x8x8xf32>
    %89 = math.exp %88 : vector<2x8x8xf32>
    %cst_30 = arith.constant dense<0.000000e+00> : vector<2x8xf32>
    %90 = vector.multi_reduction <add>, %89, %cst_30 [2] : vector<2x8x8xf32> to vector<2x8xf32>
    %91 = vector.shape_cast %90 : vector<2x8xf32> to vector<2x8x1xf32>
    %92 = arith.truncf %89 : vector<2x8x8xf32> to vector<2x8x8xbf16>
    "tpu.trace_start"() <{level = 10 : i32, message = "bqk,bkd->bqd"}> : () -> ()
    %cst_31 = arith.constant dense<0.000000e+00> : vector<2x8x8xf32>
    %93 = tpu.matmul %92, %81, %cst_31 {dimension_numbers = #tpu.dot_dimension_numbers<[2], [1], [1], [2], [0, 0, 0, 1, 1, 2], [0], [0]>} : vector<2x8x8xbf16>, vector<2x8x8xbf16>, vector<2x8x8xf32> -> vector<2x8x8xf32>
    "tpu.trace_stop"() : () -> ()
    %94 = tpu.reciprocal %91 {approx = true} : vector<2x8x1xf32> -> vector<2x8x1xf32>
    %95 = vector.broadcast %94 : vector<2x8x1xf32> to vector<2x8x8xf32>
    %96 = arith.mulf %93, %95 : vector<2x8x8xf32>
    %97 = vector.shape_cast %96 : vector<2x8x8xf32> to vector<16x8xf32>
    %98 = arith.truncf %97 : vector<16x8xf32> to vector<16x8xbf16>
    %c0_32 = arith.constant 0 : index
    %c24 = arith.constant 24 : index
    %99 = vector.load %arg17[%c0_32, %c24] : memref<16x32xbf16, #tpu.memory_space<vmem>>, vector<16x8xbf16>
    tpu.vector_store %arg17[%c0_32, %c24], %98 {strides = array<i32>} : memref<16x32xbf16, #tpu.memory_space<vmem>>, vector<16x8xbf16>,
    %c0_33 = arith.constant 0 : index
    %c0_34 = arith.constant 0 : index
    %100 = vector.load %arg17[%c0_33, %c0_34] : memref<16x32xbf16, #tpu.memory_space<vmem>>, vector<16x32xbf16>
    %c0_35 = arith.constant 0 : index
    %c0_36 = arith.constant 0 : index
    %c0_37 = arith.constant 0 : index
    %101 = vector.load %arg6[%c0_35, %c0_36, %c0_37] : memref<1x32x32xbf16, #tpu.memory_space<vmem>>, vector<1x32x32xbf16>
    %102 = vector.shape_cast %101 : vector<1x32x32xbf16> to vector<32x32xbf16>
    %cst_38 = arith.constant dense<0.000000e+00> : vector<16x32xf32>
    %103 = tpu.matmul %100, %102, %cst_38 {dimension_numbers = #tpu.dot_dimension_numbers<[1], [0], [0], [1], [0, 0, 1, 1], [], []>} : vector<16x32xbf16>, vector<32x32xbf16>, vector<16x32xf32> -> vector<16x32xf32>
    %c0_39 = arith.constant 0 : index
    %c0_40 = arith.constant 0 : index
    %c0_41 = arith.constant 0 : index
    %104 = vector.load %arg7[%c0_39, %c0_40, %c0_41] : memref<1x1x32xf32, #tpu.memory_space<vmem>>, vector<1x1x32xf32>
    %105 = vector.shape_cast %104 : vector<1x1x32xf32> to vector<1x32xf32>
    %106 = vector.broadcast %105 : vector<1x32xf32> to vector<16x32xf32>
    %107 = arith.addf %103, %106 : vector<16x32xf32>
    %108 = arith.addf %4, %107 : vector<16x32xf32>
    %c0_42 = arith.constant 0 : index
    %c0_43 = arith.constant 0 : index
    %c0_44 = arith.constant 0 : index
    %109 = vector.load %arg8[%c0_42, %c0_43, %c0_44] : memref<1x1x32xf32, #tpu.memory_space<vmem>>, vector<1x1x32xf32>
    %110 = vector.shape_cast %109 : vector<1x1x32xf32> to vector<1x32xf32>
    %c0_45 = arith.constant 0 : index
    %c0_46 = arith.constant 0 : index
    %c0_47 = arith.constant 0 : index
    %111 = vector.load %arg9[%c0_45, %c0_46, %c0_47] : memref<1x1x32xf32, #tpu.memory_space<vmem>>, vector<1x1x32xf32>
    %112 = vector.shape_cast %111 : vector<1x1x32xf32> to vector<1x32xf32>
    %cst_48 = arith.constant dense<0.000000e+00> : vector<16xf32>
    %113 = vector.multi_reduction <add>, %108, %cst_48 [1] : vector<16x32xf32> to vector<16xf32>
    %114 = vector.shape_cast %113 : vector<16xf32> to vector<16x1xf32>
    %cst_49 = arith.constant 3.200000e+01 : f32
    %115 = vector.broadcast %cst_49 : f32 to vector<16x1xf32>
    %116 = arith.divf %114, %115 : vector<16x1xf32>
    %117 = vector.broadcast %116 : vector<16x1xf32> to vector<16x32xf32>
    %118 = arith.subf %108, %117 : vector<16x32xf32>
    %119 = arith.mulf %118, %118 : vector<16x32xf32>
    %cst_50 = arith.constant dense<0.000000e+00> : vector<16xf32>
    %120 = vector.multi_reduction <add>, %119, %cst_50 [1] : vector<16x32xf32> to vector<16xf32>
    %121 = vector.shape_cast %120 : vector<16xf32> to vector<16x1xf32>
    %cst_51 = arith.constant 3.200000e+01 : f32
    %122 = vector.broadcast %cst_51 : f32 to vector<16x1xf32>
    %123 = arith.divf %121, %122 : vector<16x1xf32>
    %cst_52 = arith.constant 9.99999974E-6 : f32
    %124 = vector.broadcast %cst_52 : f32 to vector<16x1xf32>
    %125 = arith.addf %123, %124 : vector<16x1xf32>
    %126 = math.rsqrt %125 : vector<16x1xf32>
    %127 = vector.broadcast %126 : vector<16x1xf32> to vector<16x32xf32>
    %128 = arith.mulf %118, %127 : vector<16x32xf32>
    %129 = vector.broadcast %110 : vector<1x32xf32> to vector<16x32xf32>
    %130 = arith.mulf %128, %129 : vector<16x32xf32>
    %131 = vector.broadcast %112 : vector<1x32xf32> to vector<16x32xf32>
    %132 = arith.addf %130, %131 : vector<16x32xf32>
    %133 = arith.truncf %132 : vector<16x32xf32> to vector<16x32xbf16>
    %c0_53 = arith.constant 0 : index
    %c0_54 = arith.constant 0 : index
    %c0_55 = arith.constant 0 : index
    %134 = vector.load %arg10[%c0_53, %c0_54, %c0_55] : memref<1x32x64xbf16, #tpu.memory_space<vmem>>, vector<1x32x64xbf16>
    %135 = vector.shape_cast %134 : vector<1x32x64xbf16> to vector<32x64xbf16>
    %cst_56 = arith.constant dense<0.000000e+00> : vector<16x64xf32>
    %136 = tpu.matmul %133, %135, %cst_56 {dimension_numbers = #tpu.dot_dimension_numbers<[1], [0], [0], [1], [0, 0, 1, 1], [], []>} : vector<16x32xbf16>, vector<32x64xbf16>, vector<16x64xf32> -> vector<16x64xf32>
    %c0_57 = arith.constant 0 : index
    %c0_58 = arith.constant 0 : index
    %c0_59 = arith.constant 0 : index
    %137 = vector.load %arg11[%c0_57, %c0_58, %c0_59] : memref<1x1x64xf32, #tpu.memory_space<vmem>>, vector<1x1x64xf32>
    %138 = vector.shape_cast %137 : vector<1x1x64xf32> to vector<1x64xf32>
    %139 = vector.broadcast %138 : vector<1x64xf32> to vector<16x64xf32>
    %140 = arith.addf %136, %139 : vector<16x64xf32>
    %cst_60 = arith.constant 0.000000e+00 : f32
    %141 = vector.broadcast %cst_60 : f32 to vector<16x64xf32>
    %142 = arith.maximumf %140, %141 : vector<16x64xf32>
    %143 = arith.truncf %142 : vector<16x64xf32> to vector<16x64xbf16>
    %c0_61 = arith.constant 0 : index
    %c0_62 = arith.constant 0 : index
    %c0_63 = arith.constant 0 : index
    %144 = vector.load %arg12[%c0_61, %c0_62, %c0_63] : memref<1x64x32xbf16, #tpu.memory_space<vmem>>, vector<1x64x32xbf16>
    %145 = vector.shape_cast %144 : vector<1x64x32xbf16> to vector<64x32xbf16>
    %cst_64 = arith.constant dense<0.000000e+00> : vector<16x32xf32>
    %146 = tpu.matmul %143, %145, %cst_64 {dimension_numbers = #tpu.dot_dimension_numbers<[1], [0], [0], [1], [0, 0, 1, 1], [], []>} : vector<16x64xbf16>, vector<64x32xbf16>, vector<16x32xf32> -> vector<16x32xf32>
    %c0_65 = arith.constant 0 : index
    %c0_66 = arith.constant 0 : index
    %c0_67 = arith.constant 0 : index
    %147 = vector.load %arg13[%c0_65, %c0_66, %c0_67] : memref<1x1x32xf32, #tpu.memory_space<vmem>>, vector<1x1x32xf32>
    %148 = vector.shape_cast %147 : vector<1x1x32xf32> to vector<1x32xf32>
    %149 = vector.broadcast %148 : vector<1x32xf32> to vector<16x32xf32>
    %150 = arith.addf %146, %149 : vector<16x32xf32>
    %151 = arith.addf %132, %150 : vector<16x32xf32>
    %c0_68 = arith.constant 0 : index
    %c0_69 = arith.constant 0 : index
    %c0_70 = arith.constant 0 : index
    %152 = vector.load %arg14[%c0_68, %c0_69, %c0_70] : memref<1x1x32xf32, #tpu.memory_space<vmem>>, vector<1x1x32xf32>
    %153 = vector.shape_cast %152 : vector<1x1x32xf32> to vector<1x32xf32>
    %c0_71 = arith.constant 0 : index
    %c0_72 = arith.constant 0 : index
    %c0_73 = arith.constant 0 : index
    %154 = vector.load %arg15[%c0_71, %c0_72, %c0_73] : memref<1x1x32xf32, #tpu.memory_space<vmem>>, vector<1x1x32xf32>
    %155 = vector.shape_cast %154 : vector<1x1x32xf32> to vector<1x32xf32>
    %cst_74 = arith.constant dense<0.000000e+00> : vector<16xf32>
    %156 = vector.multi_reduction <add>, %151, %cst_74 [1] : vector<16x32xf32> to vector<16xf32>
    %157 = vector.shape_cast %156 : vector<16xf32> to vector<16x1xf32>
    %cst_75 = arith.constant 3.200000e+01 : f32
    %158 = vector.broadcast %cst_75 : f32 to vector<16x1xf32>
    %159 = arith.divf %157, %158 : vector<16x1xf32>
    %160 = vector.broadcast %159 : vector<16x1xf32> to vector<16x32xf32>
    %161 = arith.subf %151, %160 : vector<16x32xf32>
    %162 = arith.mulf %161, %161 : vector<16x32xf32>
    %cst_76 = arith.constant dense<0.000000e+00> : vector<16xf32>
    %163 = vector.multi_reduction <add>, %162, %cst_76 [1] : vector<16x32xf32> to vector<16xf32>
    %164 = vector.shape_cast %163 : vector<16xf32> to vector<16x1xf32>
    %cst_77 = arith.constant 3.200000e+01 : f32
    %165 = vector.broadcast %cst_77 : f32 to vector<16x1xf32>
    %166 = arith.divf %164, %165 : vector<16x1xf32>
    %cst_78 = arith.constant 9.99999974E-6 : f32
    %167 = vector.broadcast %cst_78 : f32 to vector<16x1xf32>
    %168 = arith.addf %166, %167 : vector<16x1xf32>
    %169 = math.rsqrt %168 : vector<16x1xf32>
    %170 = vector.broadcast %169 : vector<16x1xf32> to vector<16x32xf32>
    %171 = arith.mulf %161, %170 : vector<16x32xf32>
    %172 = vector.broadcast %153 : vector<1x32xf32> to vector<16x32xf32>
    %173 = arith.mulf %171, %172 : vector<16x32xf32>
    %174 = vector.broadcast %155 : vector<1x32xf32> to vector<16x32xf32>
    %175 = arith.addf %173, %174 : vector<16x32xf32>
    %176 = vector.shape_cast %175 : vector<16x32xf32> to vector<2x8x32xf32>
    %c0_79 = arith.constant 0 : index
    %c0_80 = arith.constant 0 : index
    %c0_81 = arith.constant 0 : index
    %177 = vector.load %arg16[%c0_79, %c0_80, %c0_81] : memref<2x8x32xf32, #tpu.memory_space<vmem>>, vector<2x8x32xf32>
    tpu.vector_store %arg16[%c0_79, %c0_80, %c0_81], %176 {strides = array<i32>} : memref<2x8x32xf32, #tpu.memory_space<vmem>>, vector<2x8x32xf32>,
    return
  }
  func.func @transform_0(%arg0: i32, %arg1: i32) -> (i32, i32, i32) {
    %c0_i32 = arith.constant 0 : i32
    %c0_i32_0 = arith.constant 0 : i32
    %c0_i32_1 = arith.constant 0 : i32
    return %arg0, %c0_i32, %c0_i32_0 : i32, i32, i32
  }
  func.func @transform_1(%arg0: i32, %arg1: i32) -> (i32, i32, i32) {
    %c0_i32 = arith.constant 0 : i32
    %c0_i32_0 = arith.constant 0 : i32
    %c0_i32_1 = arith.constant 0 : i32
    return %arg0, %c0_i32, %c0_i32_0 : i32, i32, i32
  }
  func.func @transform_2(%arg0: i32, %arg1: i32) -> (i32, i32, i32) {
    %c0_i32 = arith.constant 0 : i32
    %c0_i32_0 = arith.constant 0 : i32
    %c0_i32_1 = arith.constant 0 : i32
    return %arg1, %c0_i32, %c0_i32_0 : i32, i32, i32
  }
  func.func @transform_3(%arg0: i32, %arg1: i32) -> (i32, i32, i32) {
    %c0_i32 = arith.constant 0 : i32
    %c0_i32_0 = arith.constant 0 : i32
    %c0_i32_1 = arith.constant 0 : i32
    return %arg1, %c0_i32, %c0_i32_0 : i32, i32, i32
  }
  func.func @transform_4(%arg0: i32, %arg1: i32) -> (i32, i32, i32) {
    %c0_i32 = arith.constant 0 : i32
    %c0_i32_0 = arith.constant 0 : i32
    %c0_i32_1 = arith.constant 0 : i32
    return %arg1, %c0_i32, %c0_i32_0 : i32, i32, i32
  }
  func.func @transform_5(%arg0: i32, %arg1: i32) -> (i32, i32, i32) {
    %c0_i32 = arith.constant 0 : i32
    %c0_i32_0 = arith.constant 0 : i32
    %c0_i32_1 = arith.constant 0 : i32
    return %arg1, %c0_i32, %c0_i32_0 : i32, i32, i32
  }
  func.func @transform_6(%arg0: i32, %arg1: i32) -> (i32, i32, i32) {
    %c0_i32 = arith.constant 0 : i32
    %c0_i32_0 = arith.constant 0 : i32
    %c0_i32_1 = arith.constant 0 : i32
    return %arg1, %c0_i32, %c0_i32_0 : i32, i32, i32
  }
  func.func @transform_7(%arg0: i32, %arg1: i32) -> (i32, i32, i32) {
    %c0_i32 = arith.constant 0 : i32
    %c0_i32_0 = arith.constant 0 : i32
    %c0_i32_1 = arith.constant 0 : i32
    return %arg1, %c0_i32, %c0_i32_0 : i32, i32, i32
  }
  func.func @transform_8(%arg0: i32, %arg1: i32) -> (i32, i32, i32) {
    %c0_i32 = arith.constant 0 : i32
    %c0_i32_0 = arith.constant 0 : i32
    %c0_i32_1 = arith.constant 0 : i32
    return %arg1, %c0_i32, %c0_i32_0 : i32, i32, i32
  }
  func.func @transform_9(%arg0: i32, %arg1: i32) -> (i32, i32, i32) {
    %c0_i32 = arith.constant 0 : i32
    %c0_i32_0 = arith.constant 0 : i32
    %c0_i32_1 = arith.constant 0 : i32
    return %arg1, %c0_i32, %c0_i32_0 : i32, i32, i32
  }
  func.func @transform_10(%arg0: i32, %arg1: i32) -> (i32, i32, i32) {
    %c0_i32 = arith.constant 0 : i32
    %c0_i32_0 = arith.constant 0 : i32
    %c0_i32_1 = arith.constant 0 : i32
    return %arg1, %c0_i32, %c0_i32_0 : i32, i32, i32
  }
  func.func @transform_11(%arg0: i32, %arg1: i32) -> (i32, i32, i32) {
    %c0_i32 = arith.constant 0 : i32
    %c0_i32_0 = arith.constant 0 : i32
    %c0_i32_1 = arith.constant 0 : i32
    return %arg1, %c0_i32, %c0_i32_0 : i32, i32, i32
  }
  func.func @transform_12(%arg0: i32, %arg1: i32) -> (i32, i32, i32) {
    %c0_i32 = arith.constant 0 : i32
    %c0_i32_0 = arith.constant 0 : i32
    %c0_i32_1 = arith.constant 0 : i32
    return %arg1, %c0_i32, %c0_i32_0 : i32, i32, i32
  }
  func.func @transform_13(%arg0: i32, %arg1: i32) -> (i32, i32, i32) {
    %c0_i32 = arith.constant 0 : i32
    %c0_i32_0 = arith.constant 0 : i32
    %c0_i32_1 = arith.constant 0 : i32
    return %arg1, %c0_i32, %c0_i32_0 : i32, i32, i32
  }
  func.func @transform_14(%arg0: i32, %arg1: i32) -> (i32, i32, i32) {
    %c0_i32 = arith.constant 0 : i32
    %c0_i32_0 = arith.constant 0 : i32
    %c0_i32_1 = arith.constant 0 : i32
    return %arg0, %c0_i32, %c0_i32_0 : i32, i32, i32
  }
}

</mosaic_0001>

<bundles_post_ra>
// kernel: tpu_custom_call.1
= control target key start
LH: loop header
LB: loop body
LE: loop exit
PB: predicated region body
PF: predicated region fallthrough
CT: control target
= control target key end

     0   :  { %s4425_s0 = inlined_call_operand.hbm [shape: bf16[2,8,32], index: 0, kind: input, shape index: {}]   ;;  %s4426_s1 = inlined_call_operand.hbm [shape: f32[2,1,8], index: 1, kind: input, shape index: {}]   ;;  %s4427_s2 = inlined_call_operand.hbm [shape: bf16[2,32,96], index: 2, kind: input, shape index: {}]   ;;  %s4428_s3 = inlined_call_operand.hbm [shape: f32[2,1,96], index: 3, kind: input, shape index: {}]   ;;  %s4429_s4 = inlined_call_operand.hbm [shape: bf16[2,32,32], index: 4, kind: input, shape index: {}]   ;;  %s4430_s5 = inlined_call_operand.hbm [shape: f32[2,1,32], index: 5, kind: input, shape index: {}]   ;;  %s4431_s6 = inlined_call_operand.hbm [shape: f32[2,1,32], index: 6, kind: input, shape index: {}]   ;;  %s4432_s7 = inlined_call_operand.hbm [shape: f32[2,1,32], index: 7, kind: input, shape index: {}]   ;;  %s4433_s8 = inlined_call_operand.hbm [shape: bf16[2,32,64], index: 8, kind: input, shape index: {}]   ;;  %s4434_s9 = inlined_call_operand.hbm [shape: f32[2,1,64], index: 9, kind: input, shape index: {}]   ;;  %s4435_s10 = inlined_call_operand.hbm [shape: bf16[2,64,32], index: 10, kind: input, shape index: {}]   ;;  %s4436_s11 = inlined_call_operand.hbm [shape: f32[2,1,32], index: 11, kind: input, shape index: {}]   ;;  %s4437_s12 = inlined_call_operand.hbm [shape: f32[2,1,32], index: 12, kind: input, shape index: {}]   ;;  %s4438_s13 = inlined_call_operand.hbm [shape: f32[2,1,32], index: 13, kind: input, shape index: {}]   ;;  %s4439_s14 = inlined_call_operand.hbm [shape: f32[2,8,32], index: 14, kind: output, shape index: {}]  }
   0x1   :  { %4476 = sst [smem:[#allocation34_spill]] %s4425_s0 }
   0x2   :  { %4477 = sst [smem:[#allocation35_spill]] %s4426_s1 }
   0x3   :  { %4478 = sst [smem:[#allocation36_spill]] %s4427_s2 }
   0x4   :  { %4479 = sst [smem:[#allocation37_spill]] %s4428_s3 }
   0x5   :  { %4480 = sst [smem:[#allocation38_spill]] %s4435_s10 }
   0x6   :  { %4481 = sst [smem:[#allocation39_spill]] %s4436_s11 }
   0x7   :  { %4482 = sst [smem:[#allocation40_spill]] %s4437_s12 }
   0x8   :  { %4483 = sst [smem:[#allocation41_spill]] %s4438_s13 }
   0x9   :  { %4484 = sst [smem:[#allocation42_spill]] %s4439_s14 }
   0xa   :  { %19 = vsyncpa [#allocation4], 0 }
   0xb   :  { %20 = vsyncpa [#allocation7], 0 }
   0xc   :  { %21 = vsyncpa [#allocation5], 0  ;;  %s3597_s29 = smov 0   ;;  %s3599_s30 = smov 0  }
   0xd   :  { %s3601_s15 = smov 0   ;;  %s3603_s16 = smov 0  }
   0xe   :  { %s3605_s17 = smov 0   ;;  %s3607_s18 = smov 0  }
   0xf LB: > { %4485 = sst [smem:[#allocation25_spill]] %s3468_s30  ;;  %s3626_s19 = sadd.s32 4294967295, %s3484_s18   ;;  %s3484_s18 = sphi %s3607_s18, %s27_s18   ;;  %s3480_s17 = sphi %s3605_s17, %s4545_s17   ;;  %s3476_s16 = sphi %s3603_s16, %s4544_s16   ;;  %s3472_s15 = sphi %s3601_s15, %s4547_s15   ;;  %s3468_s30 = sphi %s3599_s30, %s4546_s30   ;;  %s3464_s29 = sphi %s3597_s29, %s4543_s29  }
  0x10   : > { %4486 = sst [smem:[#allocation26_spill]] %s3476_s16  ;;  %p105_p0 = scmp.ne.s32.totalorder %s3472_s15, %s3468_s30 }
  0x11   : > { %4487 = sst [smem:[#allocation27_spill]] %s3480_s17  ;;  %p106_p1 = scmp.eq.s32.totalorder %s3484_s18, 0 }
  0x12   : > { %4488 = sst [smem:[#allocation28_spill]] %s3484_s18  ;;  %p111_p2 = scmp.ne.s32.totalorder %s3468_s30, %s3464_s29 }
  0x13   : > { %4489 = sst [smem:[#allocation29_spill]] %s3626_s19  ;;  %p4443_p3 = scmp.eq.s32.totalorder %s3626_s19, 0 }
  0x14   : > { %p3634_p4 = por %p106_p1, %p105_p0  ;;  %p2509_p5 = scmp.ge.s32.totalorder %s3484_s18, 1 }
  0x15   : > { %p3641_p6 = por %p4443_p3, %p111_p2  ;;  %p434_p7 = scmp.lt.s32.totalorder %s3484_s18, 3 }
  0x16   : > { %s3486_s24 = smov [#allocation3]   ;;  %p2853_p10 = scmp.lt.s32.totalorder %s3484_s18, 2 }
  0x17   : > { %s4491_s22 = scalar_select %p3641_p6, 1, 0 }
  0x18   : > { %p3646_p8 = pnand %p2509_p5, %p434_p7  ;;  %s449_s25 = sshll.u32 %s3486_s24, 4  ;;  %s3650_s25 = int_to_ptr.vmem [resolvable:$true] %s449_s25 }
  0x19   : > { %4492 = sst [smem:[#allocation30_spill]] %s4491_s22  ;;  %s3663_s28 = sand.u32 1, %s3472_s15  }
  0x1a   : > { %s4493_s23 = scalar_select %p3646_p8, 1, 0 }
  0x1b   : > { %p2807_p9 = pneg %p3646_p8  ;;  %p3667_p12 = pnand %p2853_p10, %p3634_p4 }
  0x1c   : > { %4494 = sst [smem:[#allocation31_spill]] %s4493_s23 }
  0x1d   : > { %p3657_p11 = pnand %p2807_p9, %p4443_p3  ;;  %s4498_s0 = sld [smem:[#allocation34_spill]] }
  0x1e   : > { %s4497_s29 = scalar_select %p3667_p12, 1, 0 }
  0x1f   : > { %s4495_s26 = scalar_select %p3657_p11, 1, 0 }
  0x20   : > { %p4460_p0 = pneg %p3657_p11 }
  0x21   : > { %4496 = sst [smem:[#allocation32_spill]] %s4495_s26 }
  0x23   : > { %s2980_s14 = scalar_lea.hbm %s4498_s0, 128 }
  0x24   : > { %p2981_p13 = scmp.ne.s32.totalorder %s4498_s0, %s2980_s14  ;;  %p2987_p4 = scmp.lt.u32.totalorder %s2980_s14, %s4498_s0 }
  0x26   : > { %p2983_p1 = pnand %p4460_p0, %p2981_p13 }
  0x28   : > { %p2984_p2 = pneg %p2983_p1 }
  0x2a   : > { %p2989_p5 = pnand %p2987_p4, %p2984_p2 }
  0x2c   : > { %2992 = shalt.err (!%p2989_p5)
}
  0x2d   : > { %s2993_s20 = scalar_lea.vmem %s3650_s25, 128  ;;  %p3001_p3 = scmp.lt.s32.totalorder %s3650_s25, %s3650_s25 }
  0x2e   : > { %p2994_p7 = scmp.ne.s32.totalorder %s3650_s25, %s2993_s20  ;;  %p3002_p13 = scmp.lt.s32.totalorder %s2993_s20, %s2993_s20 }
  0x30   : > { %p2996_p9 = pnand %p2994_p7, %p4460_p0  ;;  %p3003_p1 = por %p3002_p13, %p3001_p3 }
  0x32   : > { %p2997_p10 = pneg %p2996_p9 }
  0x34   : > { %p3004_p6 = pnand %p3003_p1, %p2997_p10 }
  0x36   : > { %3007 = shalt.err (!%p3004_p6)
}
  0x37   : > { %s4451_s16 = smov 64   ;;  %s4453_s14 = smov 4  }
  0x38   : > { %2810 = dma.hbm_to_vmem [thread:$0]  (!%p3657_p11), %s4498_s0, 128, %s3650_s25, [#allocation4], %s4451_s16, %s4451_s16, %s4453_s14  }
  0x39   : > { %s3702_s24 = sshll.u32 %s3663_s28, 4  ;;  %s36_s21 = sadd.s32 1, %s3480_s17 }
  0x3a   : > { %p37_p3 = scmp.ge.s32.totalorder %s36_s21, 2  ;;  %s3706_s20 = sshll.u32 %s3480_s17, 8 }
  0x3b   : > { %s4499_s2 = sld [smem:[#allocation36_spill]]  ;;  %s483_s13 = scalar_lea.vmem [#allocation8], %s3702_s24 }
  0x3c   : > { %s490_s22 = sshll.u32 %s483_s13, 4  ;;  %s4549_s21 = smov (%p37_p3, %s36_s21), 0  ;;  %s3717_s22 = int_to_ptr.vmem [resolvable:$true] %s490_s22 }
  0x3d   : > { %4500 = sst [smem:[#allocation33_spill]] %s4549_s21  ;;  %s95_s25 = ssub.s32 %s3480_s17, %s4549_s21 }
  0x3e   : > { %s3722_s27 = sshll.u32 %s3480_s17, 4  ;;  %p3724_p6 = scmp.eq.s32.totalorder %s95_s25, 0 }
  0x3f   : > { %s4502_s3 = sld [smem:[#allocation37_spill]]  ;;  %s4503_s13 = sand.u32 1, %s3484_s18  }
  0x40   : > { %s4501_s16 = scalar_select %p3724_p6, 1, 0 }
  0x41   : > { %s3712_s23 = scalar_lea.hbm %s4499_s2, %s3706_s20  ;;  %s3736_s0 = scalar_lea.sflag [#allocation4], %s4503_s13 }
  0x42   : > { %s3008_s1 = scalar_lea.hbm %s3712_s23, 256  ;;  %p3742_p4 = pneg %p3667_p12 }
  0x43   : > { %p3009_p2 = scmp.ne.s32.totalorder %s3712_s23, %s3008_s1  ;;  %s3013_s30 = scalar_lea.hbm %s4499_s2, 512 }
  0x44   : > { %s4504_s21 = scalar_select %p3742_p4, 1, 0 }
  0x45   : > { %s3732_s14 = scalar_lea.hbm %s4502_s3, %s3722_s27  ;;  %p3011_p5 = pnand %p3742_p4, %p3009_p2 }
  0x46   : > { %p3014_p9 = scmp.lt.u32.totalorder %s3712_s23, %s4499_s2  ;;  %p3015_p10 = scmp.lt.u32.totalorder %s3013_s30, %s3008_s1 }
  0x47   : > { %p3012_p7 = pneg %p3011_p5  ;;  %p3017_p1 = scmp.lt.u32.totalorder %s3008_s1, %s3712_s23 }
  0x48   : > { %p3016_p13 = por %p3015_p10, %p3014_p9 }
  0x4a   : > { %p3018_p3 = por %p3017_p1, %p3016_p13 }
  0x4c   : > { %p3019_p0 = pnand %p3018_p3, %p3012_p7 }
  0x4e   : > { %3022 = shalt.err (!%p3019_p0)
}
  0x4f   : > { %s3023_s13 = scalar_lea.vmem %s3717_s22, 256  ;;  %s3489_s26 = smov [#allocation8]  }
  0x50   : > { %p3024_p2 = scmp.ne.s32.totalorder %s3717_s22, %s3023_s13  ;;  %s3028_s25 = sshll.u32 %s3489_s26, 4  ;;  %s3029_s25 = int_to_ptr.vmem [resolvable:$false] %s3028_s25 }
  0x51   : > { %s3030_s12 = scalar_lea.vmem %s3029_s25, 512  ;;  %p3031_p11 = scmp.lt.s32.totalorder %s3717_s22, %s3029_s25 }
  0x52   : > { %p3026_p5 = pnand %p3024_p2, %p3742_p4  ;;  %p3032_p6 = scmp.lt.s32.totalorder %s3030_s12, %s3023_s13 }
  0x54   : > { %p3027_p8 = pneg %p3026_p5  ;;  %p3033_p9 = por %p3032_p6, %p3031_p11 }
  0x56   : > { %p3034_p10 = pnand %p3033_p9, %p3027_p8 }
  0x58   : > { %3037 = shalt.err (!%p3034_p10)
}
  0x59   : > { %s4505_s1 = smov 4   ;;  %s4506_s30 = smov 64  }
  0x5a   : > { %2817 = dma.hbm_to_vmem [thread:$0]  (!%p3667_p12), %s3712_s23, 256, %s3717_s22, %s3736_s0, %s4506_s30, %s4506_s30, %s4505_s1  }
  0x5b   : > { %s4507_s19 = sadd.s32 1, %s3472_s15  ;;  %p4508_p8 = scmp.ne.s32.totalorder %s4501_s16, 0 }
  0x5c   : > { %s503_s26 = scalar_lea.vmem [#allocation9], %s3663_s28  ;;  %s3781_s18 = scalar_lea.hbm %s4429_s4, %s3706_s20 }
  0x5d   : > { %s3774_s13 = scalar_select %p4508_p8, %s3472_s15, %s4507_s19  }
  0x5e   : > { %s510_s25 = sshll.u32 %s503_s26, 4  ;;  %s3038_s11 = scalar_lea.hbm %s3732_s14, 16  ;;  %s511_s25 = int_to_ptr.vmem [resolvable:$true] %s510_s25 }
  0x5f   : > { %p3039_p11 = scmp.ne.s32.totalorder %s3732_s14, %s3038_s11  ;;  %s3043_s23 = scalar_lea.hbm %s4502_s3, 32 }
  0x60   : > { %p3044_p7 = scmp.lt.u32.totalorder %s3732_s14, %s4502_s3  ;;  %p3045_p13 = scmp.lt.u32.totalorder %s3043_s23, %s3038_s11 }
  0x61   : > { %p3041_p0 = pnand %p3039_p11, %p3742_p4  ;;  %p3047_p3 = scmp.lt.u32.totalorder %s3038_s11, %s3732_s14 }
  0x62   : > { %p3046_p1 = por %p3045_p13, %p3044_p7 }
  0x63   : > { %p3042_p6 = pneg %p3041_p0 }
  0x64   : > { %p3048_p2 = por %p3047_p3, %p3046_p1 }
  0x66   : > { %p3049_p5 = pnand %p3048_p2, %p3042_p6 }
  0x68   : > { %3052 = shalt.err (!%p3049_p5)
}
  0x69   : > { %s3053_s2 = scalar_lea.vmem %s511_s25, 16  ;;  %s3490_s19 = smov [#allocation9]  }
  0x6a   : > { %p3054_p9 = scmp.ne.s32.totalorder %s511_s25, %s3053_s2  ;;  %s3058_s26 = sshll.u32 %s3490_s19, 4  ;;  %s3059_s26 = int_to_ptr.vmem [resolvable:$false] %s3058_s26 }
  0x6b   : > { %s3060_s10 = scalar_lea.vmem %s3059_s26, 32  ;;  %p3061_p11 = scmp.lt.s32.totalorder %s511_s25, %s3059_s26 }
  0x6c   : > { %p3056_p10 = pnand %p3054_p9, %p3742_p4  ;;  %p3062_p0 = scmp.lt.s32.totalorder %s3060_s10, %s3053_s2 }
  0x6e   : > { %p3057_p8 = pneg %p3056_p10  ;;  %p3063_p12 = por %p3062_p0, %p3061_p11 }
  0x70   : > { %p3064_p7 = pnand %p3063_p12, %p3057_p8 }
  0x72   : > { %3067 = shalt.err (!%p3064_p7)
}
  0x73   : > { %p4509_p13 = scmp.ne.s32.totalorder %s4497_s29, 0  ;;  %s521_s11 = scalar_lea.vmem [#allocation10], %s3702_s24 }
  0x74   : > { %s528_s17 = sshll.u32 %s521_s11, 4  ;;  %s3808_s16 = scalar_lea.hbm %s4430_s5, %s3722_s27  ;;  %s3802_s17 = int_to_ptr.vmem [resolvable:$true] %s528_s17 }
  0x75   : > { %2820 = dma.hbm_to_vmem [thread:$0]  (!%p4509_p13), %s3732_s14, 16, %s511_s25, %s3736_s0  }
  0x76   : > { %s3068_s22 = scalar_lea.hbm %s3781_s18, 256  ;;  %s3073_s26 = scalar_lea.hbm %s4429_s4, 512 }
  0x77   : > { %p3069_p12 = scmp.ne.s32.totalorder %s3781_s18, %s3068_s22  ;;  %p3074_p3 = scmp.lt.u32.totalorder %s3781_s18, %s4429_s4 }
  0x78   : > { %p3075_p2 = scmp.lt.u32.totalorder %s3073_s26, %s3068_s22  ;;  %p3077_p9 = scmp.lt.u32.totalorder %s3068_s22, %s3781_s18 }
  0x79   : > { %p3071_p6 = pnand %p3069_p12, %p3742_p4 }
  0x7a   : > { %p3076_p5 = por %p3075_p2, %p3074_p3 }
  0x7b   : > { %p3072_p1 = pneg %p3071_p6 }
  0x7c   : > { %p3078_p10 = por %p3077_p9, %p3076_p5 }
  0x7e   : > { %p3079_p8 = pnand %p3078_p10, %p3072_p1 }
  0x80   : > { %3082 = shalt.err (!%p3079_p8)
}
  0x81   : > { %s3083_s25 = scalar_lea.vmem %s3802_s17, 256  ;;  %s3491_s11 = smov [#allocation10]  }
  0x82   : > { %p3084_p11 = scmp.ne.s32.totalorder %s3802_s17, %s3083_s25  ;;  %s3088_s12 = sshll.u32 %s3491_s11, 4  ;;  %s3089_s12 = int_to_ptr.vmem [resolvable:$false] %s3088_s12 }
  0x83   : > { %s3090_s23 = scalar_lea.vmem %s3089_s12, 512  ;;  %p3091_p12 = scmp.lt.s32.totalorder %s3802_s17, %s3089_s12 }
  0x84   : > { %p3086_p0 = pnand %p3084_p11, %p3742_p4  ;;  %p3092_p6 = scmp.lt.s32.totalorder %s3090_s23, %s3083_s25 }
  0x86   : > { %p3087_p7 = pneg %p3086_p0  ;;  %p3093_p3 = por %p3092_p6, %p3091_p12 }
  0x88   : > { %p3094_p2 = pnand %p3093_p3, %p3087_p7 }
  0x8a   : > { %3097 = shalt.err (!%p3094_p2)
}
  0x8b   : > { %2823 = dma.hbm_to_vmem [thread:$0]  (!%p4509_p13), %s3781_s18, 256, %s3802_s17, %s3736_s0, %s4506_s30, %s4506_s30, %s4505_s1  }
  0x8c   : > { %s541_s22 = scalar_lea.vmem [#allocation11], %s3663_s28  ;;  %s3840_s10 = scalar_lea.hbm %s4431_s6, %s3722_s27 }
  0x8d   : > { %s548_s2 = sshll.u32 %s541_s22, 4  ;;  %s3098_s14 = scalar_lea.hbm %s3808_s16, 16  ;;  %s549_s2 = int_to_ptr.vmem [resolvable:$true] %s548_s2 }
  0x8e   : > { %p3099_p1 = scmp.ne.s32.totalorder %s3808_s16, %s3098_s14  ;;  %s3103_s12 = scalar_lea.hbm %s4430_s5, 32 }
  0x8f   : > { %p3104_p10 = scmp.lt.u32.totalorder %s3808_s16, %s4430_s5  ;;  %p3105_p8 = scmp.lt.u32.totalorder %s3103_s12, %s3098_s14 }
  0x90   : > { %p3101_p5 = pnand %p3099_p1, %p3742_p4  ;;  %p3107_p0 = scmp.lt.u32.totalorder %s3098_s14, %s3808_s16 }
  0x91   : > { %p3106_p11 = por %p3105_p8, %p3104_p10 }
  0x92   : > { %p3102_p9 = pneg %p3101_p5 }
  0x93   : > { %p3108_p7 = por %p3107_p0, %p3106_p11 }
  0x95   : > { %p3109_p12 = pnand %p3108_p7, %p3102_p9 }
  0x97   : > { %3112 = shalt.err (!%p3109_p12)
}
  0x98   : > { %s3113_s18 = scalar_lea.vmem %s549_s2, 16  ;;  %s3492_s17 = smov [#allocation11]  }
  0x99   : > { %p3114_p6 = scmp.ne.s32.totalorder %s549_s2, %s3113_s18  ;;  %s3118_s22 = sshll.u32 %s3492_s17, 4  ;;  %s3119_s22 = int_to_ptr.vmem [resolvable:$false] %s3118_s22 }
  0x9a   : > { %s3120_s19 = scalar_lea.vmem %s3119_s22, 32  ;;  %p3121_p1 = scmp.lt.s32.totalorder %s549_s2, %s3119_s22 }
  0x9b   : > { %p3116_p3 = pnand %p3114_p6, %p3742_p4  ;;  %p3122_p5 = scmp.lt.s32.totalorder %s3120_s19, %s3113_s18 }
  0x9d   : > { %p3117_p2 = pneg %p3116_p3  ;;  %p3123_p13 = por %p3122_p5, %p3121_p1 }
  0x9f   : > { %p3124_p8 = pnand %p3123_p13, %p3117_p2 }
  0xa1   : > { %3127 = shalt.err (!%p3124_p8)
}
  0xa2   : > { %p4510_p10 = scmp.ne.s32.totalorder %s4497_s29, 0  ;;  %s558_s3 = scalar_lea.vmem [#allocation12], %s3663_s28 }
  0xa3   : > { %s565_s26 = sshll.u32 %s558_s3, 4  ;;  %s3865_s11 = scalar_lea.hbm %s4432_s7, %s3722_s27  ;;  %s566_s26 = int_to_ptr.vmem [resolvable:$true] %s565_s26 }
  0xa4   : > { %2826 = dma.hbm_to_vmem [thread:$0]  (!%p4510_p10), %s3808_s16, 16, %s549_s2, %s3736_s0  }
  0xa5   : > { %s3128_s12 = scalar_lea.hbm %s3840_s10, 16  ;;  %s3133_s17 = scalar_lea.hbm %s4431_s6, 32 }
  0xa6   : > { %p3129_p13 = scmp.ne.s32.totalorder %s3840_s10, %s3128_s12  ;;  %p3134_p0 = scmp.lt.u32.totalorder %s3840_s10, %s4431_s6 }
  0xa7   : > { %p3135_p7 = scmp.lt.u32.totalorder %s3133_s17, %s3128_s12  ;;  %p3137_p6 = scmp.lt.u32.totalorder %s3128_s12, %s3840_s10 }
  0xa8   : > { %p3131_p9 = pnand %p3129_p13, %p3742_p4 }
  0xa9   : > { %p3136_p12 = por %p3135_p7, %p3134_p0 }
  0xaa   : > { %p3132_p11 = pneg %p3131_p9 }
  0xab   : > { %p3138_p3 = por %p3137_p6, %p3136_p12 }
  0xad   : > { %p3139_p2 = pnand %p3138_p3, %p3132_p11 }
  0xaf   : > { %3142 = shalt.err (!%p3139_p2)
}
  0xb0   : > { %s3143_s16 = scalar_lea.vmem %s566_s26, 16  ;;  %s3493_s2 = smov [#allocation12]  }
  0xb1   : > { %p3144_p1 = scmp.ne.s32.totalorder %s566_s26, %s3143_s16  ;;  %s3148_s3 = sshll.u32 %s3493_s2, 4  ;;  %s3149_s3 = int_to_ptr.vmem [resolvable:$false] %s3148_s3 }
  0xb2   : > { %s3150_s14 = scalar_lea.vmem %s3149_s3, 32  ;;  %p3151_p13 = scmp.lt.s32.totalorder %s566_s26, %s3149_s3 }
  0xb3   : > { %p3146_p5 = pnand %p3144_p1, %p3742_p4  ;;  %p3152_p9 = scmp.lt.s32.totalorder %s3150_s14, %s3143_s16 }
  0xb5   : > { %p3147_p8 = pneg %p3146_p5  ;;  %p3153_p10 = por %p3152_p9, %p3151_p13 }
  0xb7   : > { %p3154_p0 = pnand %p3153_p10, %p3147_p8 }
  0xb9   : > { %3157 = shalt.err (!%p3154_p0)
}
  0xba   : > { %p4511_p7 = scmp.ne.s32.totalorder %s4497_s29, 0  ;;  %s575_s25 = scalar_lea.vmem [#allocation13], %s3663_s28 }
  0xbb   : > { %s582_s12 = sshll.u32 %s575_s25, 4  ;;  %s3890_s17 = scalar_lea.hbm %s4433_s8, %s3706_s20  ;;  %s583_s12 = int_to_ptr.vmem [resolvable:$true] %s582_s12 }
  0xbc   : > { %2829 = dma.hbm_to_vmem [thread:$0]  (!%p4511_p7), %s3840_s10, 16, %s566_s26, %s3736_s0  }
  0xbd   : > { %s3158_s22 = scalar_lea.hbm %s3865_s11, 16  ;;  %s3163_s2 = scalar_lea.hbm %s4432_s7, 32 }
  0xbe   : > { %p3159_p10 = scmp.ne.s32.totalorder %s3865_s11, %s3158_s22  ;;  %p3164_p6 = scmp.lt.u32.totalorder %s3865_s11, %s4432_s7 }
  0xbf   : > { %p3165_p3 = scmp.lt.u32.totalorder %s3163_s2, %s3158_s22  ;;  %p3167_p1 = scmp.lt.u32.totalorder %s3158_s22, %s3865_s11 }
  0xc0   : > { %p3161_p11 = pnand %p3159_p10, %p3742_p4 }
  0xc1   : > { %p3166_p2 = por %p3165_p3, %p3164_p6 }
  0xc2   : > { %p3162_p12 = pneg %p3161_p11 }
  0xc3   : > { %p3168_p5 = por %p3167_p1, %p3166_p2 }
  0xc5   : > { %p3169_p8 = pnand %p3168_p5, %p3162_p12 }
  0xc7   : > { %3172 = shalt.err (!%p3169_p8)
}
  0xc8   : > { %s3173_s20 = scalar_lea.vmem %s583_s12, 16  ;;  %s3494_s10 = smov [#allocation13]  }
  0xc9   : > { %p3174_p13 = scmp.ne.s32.totalorder %s583_s12, %s3173_s20  ;;  %s3178_s26 = sshll.u32 %s3494_s10, 4  ;;  %s3179_s26 = int_to_ptr.vmem [resolvable:$false] %s3178_s26 }
  0xca   : > { %s3180_s25 = scalar_lea.vmem %s3179_s26, 32  ;;  %p3181_p10 = scmp.lt.s32.totalorder %s583_s12, %s3179_s26 }
  0xcb   : > { %p3176_p9 = pnand %p3174_p13, %p3742_p4  ;;  %p3182_p11 = scmp.lt.s32.totalorder %s3180_s25, %s3173_s20 }
  0xcd   : > { %p3177_p0 = pneg %p3176_p9  ;;  %p3183_p7 = por %p3182_p11, %p3181_p10 }
  0xcf   : > { %p3184_p3 = pnand %p3183_p7, %p3177_p0 }
  0xd1   : > { %3187 = shalt.err (!%p3184_p3)
}
  0xd2   : > { %p4512_p6 = scmp.ne.s32.totalorder %s4497_s29, 0  ;;  %s593_s23 = scalar_lea.vmem [#allocation14], %s3702_s24 }
  0xd3   : > { %s600_s18 = sshll.u32 %s593_s23, 4  ;;  %s3917_s16 = scalar_lea.hbm %s4434_s9, %s3722_s27  ;;  %s3911_s18 = int_to_ptr.vmem [resolvable:$true] %s600_s18 }
  0xd4   : > { %2832 = dma.hbm_to_vmem [thread:$0]  (!%p4512_p6), %s3865_s11, 16, %s583_s12, %s3736_s0  }
  0xd5   : > { %s3188_s2 = scalar_lea.hbm %s3890_s17, 256  ;;  %s3193_s20 = scalar_lea.hbm %s4433_s8, 512 }
  0xd6   : > { %p3189_p7 = scmp.ne.s32.totalorder %s3890_s17, %s3188_s2  ;;  %p3194_p1 = scmp.lt.u32.totalorder %s3890_s17, %s4433_s8 }
  0xd7   : > { %p3195_p5 = scmp.lt.u32.totalorder %s3193_s20, %s3188_s2  ;;  %p3197_p13 = scmp.lt.u32.totalorder %s3188_s2, %s3890_s17 }
  0xd8   : > { %p3191_p12 = pnand %p3189_p7, %p3742_p4 }
  0xd9   : > { %p3196_p8 = por %p3195_p5, %p3194_p1 }
  0xda   : > { %p3192_p2 = pneg %p3191_p12 }
  0xdb   : > { %p3198_p9 = por %p3197_p13, %p3196_p8 }
  0xdd   : > { %p3199_p0 = pnand %p3198_p9, %p3192_p2 }
  0xdf   : > { %3202 = shalt.err (!%p3199_p0)
}
  0xe0   : > { %s3203_s24 = scalar_lea.vmem %s3911_s18, 256  ;;  %s3495_s12 = smov [#allocation14]  }
  0xe1   : > { %p3204_p10 = scmp.ne.s32.totalorder %s3911_s18, %s3203_s24  ;;  %s3208_s26 = sshll.u32 %s3495_s12, 4  ;;  %s3209_s26 = int_to_ptr.vmem [resolvable:$false] %s3208_s26 }
  0xe2   : > { %s3210_s25 = scalar_lea.vmem %s3209_s26, 512  ;;  %p3211_p7 = scmp.lt.s32.totalorder %s3911_s18, %s3209_s26 }
  0xe3   : > { %p3206_p11 = pnand %p3204_p10, %p3742_p4  ;;  %p3212_p12 = scmp.lt.s32.totalorder %s3210_s25, %s3203_s24 }
  0xe5   : > { %p3207_p3 = pneg %p3206_p11  ;;  %p3213_p1 = por %p3212_p12, %p3211_p7 }
  0xe7   : > { %p3214_p5 = pnand %p3213_p1, %p3207_p3 }
  0xe9   : > { %3217 = shalt.err (!%p3214_p5)
}
  0xea   : > { %2835 = dma.hbm_to_vmem [thread:$0]  (!%p4512_p6), %s3890_s17, 256, %s3911_s18, %s3736_s0, %s4506_s30, %s4506_s30, %s4505_s1  }
  0xeb   : > { %s613_s23 = scalar_lea.vmem [#allocation15], %s3663_s28  ;;  %s2527_s19 = sshll.u32 %s3663_s28, 5 }
  0xec   : > { %s620_s22 = sshll.u32 %s613_s23, 4  ;;  %s3218_s2 = scalar_lea.hbm %s3917_s16, 16  ;;  %s621_s22 = int_to_ptr.vmem [resolvable:$true] %s620_s22 }
  0xed   : > { %p3219_p2 = scmp.ne.s32.totalorder %s3917_s16, %s3218_s2  ;;  %s3223_s20 = scalar_lea.hbm %s4434_s9, 32 }
  0xee   : > { %p3224_p9 = scmp.lt.u32.totalorder %s3917_s16, %s4434_s9  ;;  %p3225_p0 = scmp.lt.u32.totalorder %s3223_s20, %s3218_s2 }
  0xef   : > { %p3221_p8 = pnand %p3219_p2, %p3742_p4  ;;  %p3227_p11 = scmp.lt.u32.totalorder %s3218_s2, %s3917_s16 }
  0xf0   : > { %p3226_p10 = por %p3225_p0, %p3224_p9 }
  0xf1   : > { %p3222_p13 = pneg %p3221_p8 }
  0xf2   : > { %p3228_p3 = por %p3227_p11, %p3226_p10 }
  0xf4   : > { %p3229_p7 = pnand %p3228_p3, %p3222_p13 }
  0xf6   : > { %3232 = shalt.err (!%p3229_p7)
}
  0xf7   : > { %s3233_s17 = scalar_lea.vmem %s621_s22, 16  ;;  %s3496_s18 = smov [#allocation15]  }
  0xf8   : > { %p3234_p12 = scmp.ne.s32.totalorder %s621_s22, %s3233_s17  ;;  %s3238_s24 = sshll.u32 %s3496_s18, 4  ;;  %s3239_s24 = int_to_ptr.vmem [resolvable:$false] %s3238_s24 }
  0xf9   : > { %s3240_s12 = scalar_lea.vmem %s3239_s24, 32  ;;  %p3241_p2 = scmp.lt.s32.totalorder %s621_s22, %s3239_s24 }
  0xfa   : > { %p3236_p1 = pnand %p3234_p12, %p3742_p4  ;;  %p3242_p8 = scmp.lt.s32.totalorder %s3240_s12, %s3233_s17 }
  0xfc   : > { %p3237_p5 = pneg %p3236_p1  ;;  %p3243_p6 = por %p3242_p8, %p3241_p2 }
  0xfe   : > { %p3244_p0 = pnand %p3243_p6, %p3237_p5 }
 0x100   : > { %3247 = shalt.err (!%p3244_p0)
}
 0x101   : > { %p4513_p9 = scmp.ne.s32.totalorder %s4497_s29, 0  ;;  %s4514_s26 = sld [smem:[#allocation27_spill]] }
 0x102   : > { %s631_s23 = scalar_lea.vmem [#allocation16], %s2527_s19  ;;  %s4515_s20 = sld [smem:[#allocation38_spill]] }
 0x103   : > { %2838 = dma.hbm_to_vmem [thread:$0]  (!%p4513_p9), %s3917_s16, 16, %s621_s22, %s3736_s0  }
 0x104   : > { %s638_s2 = sshll.u32 %s631_s23, 4  ;;  %s3972_s2 = int_to_ptr.vmem [resolvable:$true] %s638_s2 }
 0x107   : > { %s2588_s25 = sshll.u32 %s4514_s26, 9 }
 0x108   : > { %s3970_s10 = scalar_lea.hbm %s4515_s20, %s2588_s25  ;;  %s3253_s19 = scalar_lea.hbm %s4515_s20, 1024 }
 0x109   : > { %s3248_s11 = scalar_lea.hbm %s3970_s10, 512  ;;  %p3254_p11 = scmp.lt.u32.totalorder %s3970_s10, %s4515_s20 }
 0x10a   : > { %p3249_p6 = scmp.ne.s32.totalorder %s3970_s10, %s3248_s11  ;;  %p3255_p3 = scmp.lt.u32.totalorder %s3253_s19, %s3248_s11 }
 0x10b   : > { %p3257_p12 = scmp.lt.u32.totalorder %s3248_s11, %s3970_s10 }
 0x10c   : > { %p3251_p13 = pnand %p3249_p6, %p3742_p4  ;;  %p3256_p7 = por %p3255_p3, %p3254_p11 }
 0x10e   : > { %p3252_p10 = pneg %p3251_p13  ;;  %p3258_p1 = por %p3257_p12, %p3256_p7 }
 0x110   : > { %p3259_p5 = pnand %p3258_p1, %p3252_p10 }
 0x112   : > { %3262 = shalt.err (!%p3259_p5)
}
 0x113   : > { %s3263_s24 = scalar_lea.vmem %s3972_s2, 512  ;;  %s3497_s12 = smov [#allocation16]  }
 0x114   : > { %p3264_p2 = scmp.ne.s32.totalorder %s3972_s2, %s3263_s24  ;;  %s3268_s26 = sshll.u32 %s3497_s12, 4  ;;  %s3269_s26 = int_to_ptr.vmem [resolvable:$false] %s3268_s26 }
 0x115   : > { %s3270_s25 = scalar_lea.vmem %s3269_s26, 1024  ;;  %p3271_p6 = scmp.lt.s32.totalorder %s3972_s2, %s3269_s26 }
 0x116   : > { %p3266_p8 = pnand %p3264_p2, %p3742_p4  ;;  %p3272_p13 = scmp.lt.s32.totalorder %s3270_s25, %s3263_s24 }
 0x118   : > { %p3267_p0 = pneg %p3266_p8  ;;  %p3273_p11 = por %p3272_p13, %p3271_p6 }
 0x11a   : > { %p3274_p3 = pnand %p3273_p11, %p3267_p0 }
 0x11c   : > { %3277 = shalt.err (!%p3274_p3)
}
 0x11d   : > { %2841 = dma.hbm_to_vmem [thread:$0]  (!%p4513_p9), %s3970_s10, 512, %s3972_s2, %s3736_s0, %s4506_s30, %s4506_s30, %s4505_s1  }
 0x11e   : > { %s4516_s14 = sld [smem:[#allocation39_spill]]  ;;  %s651_s16 = scalar_lea.vmem [#allocation17], %s3663_s28 }
 0x11f   : > { %s658_s22 = sshll.u32 %s651_s16, 4  ;;  %s4517_s18 = sld [smem:[#allocation40_spill]]  ;;  %s659_s22 = int_to_ptr.vmem [resolvable:$true] %s658_s22 }
 0x124   : > { %s4003_s11 = scalar_lea.hbm %s4516_s14, %s3722_s27  ;;  %s3283_s2 = scalar_lea.hbm %s4516_s14, 32 }
 0x125   : > { %s4518_s24 = smov %s4517_s18  ;;  %s4010_s12 = scalar_lea.hbm %s4517_s18, %s3722_s27 }
 0x126   : > { %s3278_s26 = scalar_lea.hbm %s4003_s11, 16  ;;  %p3284_p1 = scmp.lt.u32.totalorder %s4003_s11, %s4516_s14 }
 0x127   : > { %p3279_p10 = scmp.ne.s32.totalorder %s4003_s11, %s3278_s26  ;;  %p3285_p5 = scmp.lt.u32.totalorder %s3283_s2, %s3278_s26 }
 0x128   : > { %p3287_p8 = scmp.lt.u32.totalorder %s3278_s26, %s4003_s11 }
 0x129   : > { %p3281_p7 = pnand %p3279_p10, %p3742_p4  ;;  %p3286_p2 = por %p3285_p5, %p3284_p1 }
 0x12b   : > { %p3282_p12 = pneg %p3281_p7  ;;  %p3288_p0 = por %p3287_p8, %p3286_p2 }
 0x12d   : > { %p3289_p6 = pnand %p3288_p0, %p3282_p12 }
 0x12f   : > { %3292 = shalt.err (!%p3289_p6)
}
 0x130   : > { %s3293_s23 = scalar_lea.vmem %s659_s22, 16  ;;  %s3498_s3 = smov [#allocation17]  }
 0x131   : > { %p3294_p13 = scmp.ne.s32.totalorder %s659_s22, %s3293_s23  ;;  %s3298_s16 = sshll.u32 %s3498_s3, 4  ;;  %s3299_s16 = int_to_ptr.vmem [resolvable:$false] %s3298_s16 }
 0x132   : > { %s3300_s19 = scalar_lea.vmem %s3299_s16, 32  ;;  %p3301_p10 = scmp.lt.s32.totalorder %s659_s22, %s3299_s16 }
 0x133   : > { %p3296_p11 = pnand %p3294_p13, %p3742_p4  ;;  %p3302_p7 = scmp.lt.s32.totalorder %s3300_s19, %s3293_s23 }
 0x135   : > { %p3297_p3 = pneg %p3296_p11  ;;  %p3303_p9 = por %p3302_p7, %p3301_p10 }
 0x137   : > { %p3304_p1 = pnand %p3303_p9, %p3297_p3 }
 0x139   : > { %3307 = shalt.err (!%p3304_p1)
}
 0x13a   : > { %p4519_p5 = scmp.ne.s32.totalorder %s4497_s29, 0  ;;  %s668_s17 = scalar_lea.vmem [#allocation18], %s3663_s28 }
 0x13b   : > { %s675_s18 = sshll.u32 %s668_s17, 4  ;;  %s3499_s26 = smov [#allocation6]   ;;  %s4031_s18 = int_to_ptr.vmem [resolvable:$true] %s675_s18 }
 0x13c   : > { %2844 = dma.hbm_to_vmem [thread:$0]  (!%p4519_p5), %s4003_s11, 16, %s659_s22, %s3736_s0  }
 0x13d   : > { %s465_s1 = sshll.u32 %s3499_s26, 4  ;;  %s3308_s30 = scalar_lea.hbm %s4010_s12, 16  ;;  %s466_s1 = int_to_ptr.vmem [resolvable:$true] %s465_s1 }
 0x13e   : > { %p3309_p9 = scmp.ne.s32.totalorder %s4010_s12, %s3308_s30  ;;  %s3313_s25 = scalar_lea.hbm %s4518_s24, 32 }
 0x13f   : > { %p3314_p8 = scmp.lt.u32.totalorder %s4010_s12, %s4518_s24  ;;  %p3315_p0 = scmp.lt.u32.totalorder %s3313_s25, %s3308_s30 }
 0x140   : > { %p3311_p12 = pnand %p3309_p9, %p3742_p4  ;;  %p3317_p13 = scmp.lt.u32.totalorder %s3308_s30, %s4010_s12 }
 0x141   : > { %p3316_p6 = por %p3315_p0, %p3314_p8 }
 0x142   : > { %p3312_p2 = pneg %p3311_p12 }
 0x143   : > { %p3318_p11 = por %p3317_p13, %p3316_p6 }
 0x145   : > { %p3319_p3 = pnand %p3318_p11, %p3312_p2 }
 0x147   : > { %3322 = shalt.err (!%p3319_p3)
}
 0x148   : > { %s3323_s11 = scalar_lea.vmem %s4031_s18, 16  ;;  %s3500_s22 = smov [#allocation18]  }
 0x149   : > { %p3324_p10 = scmp.ne.s32.totalorder %s4031_s18, %s3323_s11  ;;  %s3328_s16 = sshll.u32 %s3500_s22, 4  ;;  %s3329_s16 = int_to_ptr.vmem [resolvable:$false] %s3328_s16 }
 0x14a   : > { %s3330_s19 = scalar_lea.vmem %s3329_s16, 32  ;;  %p3331_p9 = scmp.lt.s32.totalorder %s4031_s18, %s3329_s16 }
 0x14b   : > { %p3326_p7 = pnand %p3324_p10, %p3742_p4  ;;  %p3332_p12 = scmp.lt.s32.totalorder %s3330_s19, %s3323_s11 }
 0x14d   : > { %p3327_p1 = pneg %p3326_p7  ;;  %p3333_p8 = por %p3332_p12, %p3331_p9 }
 0x14f   : > { %p3334_p0 = pnand %p3333_p8, %p3327_p1 }
 0x151   : > { %3337 = shalt.err (!%p3334_p0)
}
 0x152   : > { %s4520_s17 = sld [smem:[#allocation32_spill]] }
 0x153   : > { %2847 = dma.hbm_to_vmem [thread:$0]  (!%p4519_p5), %s4010_s12, 16, %s4031_s18, %s3736_s0  }
 0x154   : > { %s4521_s2 = sld [smem:[#allocation35_spill]] }
 0x158   : > { %p4522_p6 = scmp.ne.s32.totalorder %s4520_s17, 0 }
 0x15a   : > { %s3338_s10 = scalar_lea.hbm %s4521_s2, 32  ;;  %p4523_p13 = pneg %p4522_p6 }
 0x15b   : > { %p3339_p2 = scmp.ne.s32.totalorder %s4521_s2, %s3338_s10  ;;  %p3345_p10 = scmp.lt.u32.totalorder %s3338_s10, %s4521_s2 }
 0x15d   : > { %p3341_p11 = pnand %p3339_p2, %p4523_p13 }
 0x15f   : > { %p3342_p3 = pneg %p3341_p11 }
 0x161   : > { %p3347_p7 = pnand %p3345_p10, %p3342_p3 }
 0x163   : > { %3350 = shalt.err (!%p3347_p7)
}
 0x164   : > { %s3351_s12 = scalar_lea.vmem %s466_s1, 32  ;;  %p4524_p9 = pmov %p4523_p13 }
 0x165   : > { %p3352_p1 = scmp.ne.s32.totalorder %s466_s1, %s3351_s12  ;;  %p3359_p0 = scmp.lt.s32.totalorder %s466_s1, %s466_s1 }
 0x166   : > { %p3360_p5 = scmp.lt.s32.totalorder %s3351_s12, %s3351_s12 }
 0x167   : > { %p3354_p12 = pnand %p3352_p1, %p4524_p9 }
 0x168   : > { %p3361_p4 = por %p3360_p5, %p3359_p0 }
 0x169   : > { %p3355_p8 = pneg %p3354_p12 }
 0x16b   : > { %p3362_p2 = pnand %p3361_p4, %p3355_p8 }
 0x16d   : > { %3365 = shalt.err (!%p3362_p2)
}
 0x16e   : > { %s3501_s18 = smov 16   ;;  %s3502_s22 = smov 1  }
 0x16f   : > { %2813 = dma.hbm_to_vmem [thread:$0]  (!%p4522_p6), %s4521_s2, 32, %s466_s1, [#allocation7], %s3501_s18, %s3501_s18, %s3502_s22  }
 0x170   : > { %s4525_s10 = sld [smem:[#allocation41_spill]]  ;;  %s685_s23 = scalar_lea.vmem [#allocation19], %s3663_s28 }
 0x171   : > { %s692_s3 = sshll.u32 %s685_s23, 4  ;;  %p4526_p5 = scmp.ne.s32.totalorder %s4504_s21, 0  ;;  %s693_s3 = int_to_ptr.vmem [resolvable:$true] %s692_s3 }
 0x176   : > { %s4079_s25 = scalar_lea.hbm %s4525_s10, %s3722_s27  ;;  %s3371_s1 = scalar_lea.hbm %s4525_s10, 32 }
 0x177   : > { %s3366_s11 = scalar_lea.hbm %s4079_s25, 16  ;;  %p3372_p6 = scmp.lt.u32.totalorder %s4079_s25, %s4525_s10 }
 0x178   : > { %p3367_p4 = scmp.ne.s32.totalorder %s4079_s25, %s3366_s11  ;;  %p3373_p3 = scmp.lt.u32.totalorder %s3371_s1, %s3366_s11 }
 0x179   : > { %p3375_p7 = scmp.lt.u32.totalorder %s3366_s11, %s4079_s25 }
 0x17a   : > { %p3369_p13 = pnand %p3367_p4, %p4526_p5  ;;  %p3374_p10 = por %p3373_p3, %p3372_p6 }
 0x17c   : > { %p3370_p11 = pneg %p3369_p13  ;;  %p3376_p1 = por %p3375_p7, %p3374_p10 }
 0x17e   : > { %p3377_p9 = pnand %p3376_p1, %p3370_p11 }
 0x180   : > { %3380 = shalt.err (!%p3377_p9)
}
 0x181   : > { %s3381_s28 = scalar_lea.vmem %s693_s3, 16  ;;  %s3503_s27 = smov [#allocation19]  }
 0x182   : > { %p3382_p12 = scmp.ne.s32.totalorder %s693_s3, %s3381_s28  ;;  %s3386_s16 = sshll.u32 %s3503_s27, 4  ;;  %s3387_s16 = int_to_ptr.vmem [resolvable:$false] %s3386_s16 }
 0x183   : > { %s3388_s19 = scalar_lea.vmem %s3387_s16, 32  ;;  %p3389_p2 = scmp.lt.s32.totalorder %s693_s3, %s3387_s16 }
 0x184   : > { %p3384_p8 = pnand %p3382_p12, %p4526_p5  ;;  %p3390_p4 = scmp.lt.s32.totalorder %s3388_s19, %s3381_s28 }
 0x186   : > { %p3385_p0 = pneg %p3384_p8  ;;  %p3391_p13 = por %p3390_p4, %p3389_p2 }
 0x188   : > { %p3392_p3 = pnand %p3391_p13, %p3385_p0 }
 0x18a   : > { %3395 = shalt.err (!%p3392_p3)
}
 0x18b   : > { %p4527_p6 = scmp.ne.s32.totalorder %s4497_s29, 0  ;;  %s4528_s26 = sld [smem:[#allocation31_spill]] }
 0x18d   : > { %2850 = dma.hbm_to_vmem [thread:$0]  (!%p4527_p6), %s4079_s25, 16, %s693_s3, %s3736_s0  }
 0x191   : > { %p4529_p11 = scmp.ne.s32.totalorder %s4528_s26, 0 }
 0x192   : > { %s4530_s21 = sld [smem:[#allocation29_spill]] (!%p4529_p11) }
 0x193   : > { %701 = sbr.rel (%p4529_p11) target bundleno = 3964 (0xf7c), region = 76 }
 0x198   : > { %p4531_p5 = scmp.eq.s32.totalorder (!%p4529_p11), %s4530_s21, 0 }
 0x19a   : > { %3447 = dma.done.wait (%p4531_p5), [#allocation4], 128   ;;  %p4532_p10 = pmov %p4531_p5 }
 0x19b   : > { %p4533_p7 = pmov %p4531_p5 }
 0x19c   : > { %3449 = vsyncadd (%p4532_p10), [#allocation4], 4294967168 }
 0x19d   : > { %3451 = dma.done.wait (%p4533_p7), [#allocation7], 32   ;;  %p4534_p1 = pmov %p4531_p5 }
 0x19e   : > { %s4535_s29 = sld [smem:[#allocation25_spill]]  ;;  %s4536_s30 = sld [smem:[#allocation30_spill]] }
 0x19f   : > { %3453 = vsyncadd (%p4534_p1), [#allocation7], 4294967264  ;;  %s711_s23 = sand.u32 1, %s4530_s21  }
 0x1a0   : > { %s712_s3 = scalar_lea.sflag [#allocation4], %s711_s23 }
 0x1a4   : > { %s4112_s0 = sand.u32 1, %s4535_s29   ;;  %p4537_p9 = scmp.ne.s32.totalorder %s4536_s30, 0 }
 0x1a5   : > { %s4115_s25 = sshll.u32 %s4112_s0, 4 }
 0x1a6   : > { %s715_s11 = scalar_lea.vmem [#allocation8], %s4115_s25 }
 0x1a7   : > { %3455 = dma.done.wait (%p4537_p9), %s712_s3, 1408  }
 0x1a8   : > { %3457 = vsyncadd (%p4537_p9), %s712_s3, 4294965888  ;;  %s2539_s17 = sshll.u32 %s4112_s0, 5  ;;  %s723_s12 = scalar_lea.vmem [#allocation9], %s4112_s0 }
 0x1a9   : > { %s732_s1 = scalar_lea.vmem [#allocation10], %s4115_s25  ;;  %s740_s18 = scalar_lea.vmem [#allocation11], %s4112_s0 }
 0x1aa   : > { %s748_s22 = scalar_lea.vmem [#allocation12], %s4112_s0  ;;  %s756_s28 = scalar_lea.vmem [#allocation13], %s4112_s0 }
 0x1ab   : > { %s765_s27 = scalar_lea.vmem [#allocation14], %s4115_s25  ;;  %s773_s16 = scalar_lea.vmem [#allocation15], %s4112_s0 }
 0x1ac   : > { %s4130_s19 = scalar_lea.vmem [#allocation16], %s2539_s17  ;;  %s790_s26 = scalar_lea.vmem [#allocation17], %s4112_s0 }
 0x1ad   : > { %s798_s21 = scalar_lea.vmem [#allocation18], %s4112_s0  ;;  %s806_s29 = scalar_lea.vmem [#allocation19], %s4112_s0 }
 0x1ae   : > { %s4538_s30 = sld [smem:[#allocation26_spill]] }
 0x1b4   : > { %p2540_p12 = scmp.ne.s32.totalorder %s4538_s30, 0 }
 0x1b5   : > { %v2590_v0 = vld [vmem:[#allocation3] sm:$0xff] (!%p2540_p12)   ;;  %vm905_vm0 = vcmask (!%p2540_p12), 261120  }
 0x1b6   : > { %900 = sbr.rel (%p2540_p12) target bundleno = 445 (0x1bd), region = 136  ;;  %v2591_v1 = vunpack.c.l.bf16 (!%p2540_p12), %v2590_v0  ;;  %v2592_v2 = vunpack.c.h.bf16 (!%p2540_p12), %v2590_v0 }
 0x1b8   : > { %906 = vst.msk [vmem:[#allocation20] sm:$0xff] (!%p2540_p12), %vm905_vm0, %v2591_v1  ;;  %907 = vst.msk [vmem:[#allocation20 + $0x8] sm:$0xff] (!%p2540_p12), %vm905_vm0, %v2592_v2 }
 0x1bd PF: > { %v2930_v3 = vld [vmem:[%s715_s11] sm:$0xff]   ;;  %v3504_v4 = vmov 0.0   ;;  %v2931_v5 = vld [vmem:[%s715_s11 + $0x8] sm:$0xff]   ;;  %vm3505_vm1 = vmmov 0   ;;  %vm936_vm2 = vcmask 261120   ;;  %s3506_s23 = smov 96  }
 0x1be   : > { %2639 = vmatprep.subr.bf16.mxu0 %v3504_v4  ;;  %2647 = vmatprep.subr.bf16.mxu1 %v3504_v4  ;;  %v2541_v9 = vld [vmem:[%s723_s12] ss:$0 sm:$0xff]  ;;  %s3507_s3 = smov 64   ;;  %s3508_s11 = smov 88   ;;  %vm998_vm3 = vcmask 64512   ;;  %vm1119_vm4 = vcmask 1043456  }
 0x1bf   : > { %2640 = vmatpush3.bf16.msra.mxu0 %v2930_v3  ;;  %2643 = vmatprep.mubr.msk.bf16.mxu0 %vm3505_vm1, %v3504_v4  ;;  %v4140_v6 = vld [vmem:[#allocation20] sm:$0xff]  ;;  %v4142_v7 = vld [vmem:[#allocation20 + $0x8] sm:$0xff]  ;;  %s3509_s17 = smov 120   ;;  %s3510_s12 = smov 56   ;;  %vm1442_vm5 = vcmask 130112   ;;  %vm1669_vm6 = vcmask 195712  }
 0x1c0   : > { %2641 = vmatprep.subr.bf16.mxu0 %v3504_v4  ;;  %2649 = vmatprep.mubr.msk.bf16.mxu1 %vm3505_vm1, %v3504_v4  ;;  %v912_v8 = vpack.c.bf16 %v4142_v7, %v4140_v6  ;;  %v4183_v24 = vld [vmem:[#allocation6] ss:$0 sm:$0xff]  ;;  %v4186_v29 = vld [vmem:[#allocation6 + $0x1] ss:$0 sm:$0xff]  ;;  %s3511_s30 = smov 80   ;;  %vm1896_vm7 = vcmask 261312  }
 0x1c1   : > { %vm2123_vm8 = vcmask 523264   ;;  %s4539_s25 = sld [smem:[#allocation29_spill]] }
 0x1c3   : > { %2642 = vmatpush3.bf16.msra.mxu0 %v2931_v5 }
 0x1c4   : > { %2653 = vmatprep.subr.bf16.mxu0 %v3504_v4 }
 0x1c6   : > { %2644 = vmatmul.mubr.msk.bf16.vlgmr.msra.gmra.mrb[0].mxu0 %vm936_vm2, %v912_v8 }
 0x1c7   : > { %2655 = vmatprep.mubr.msk.bf16.mxu0 %vm3505_vm1, %v3504_v4  ;;  %p2856_p8 = scmp.eq.s32.totalorder %s4539_s25, 1 }
 0x299   : > { %v974_v10 = vpop.f32.mrb[0].mxu0 }
 0x29a   : > { %v975_v11 = vadd.f32 %v2541_v9, %v974_v10  ;;  %v2645_v12 = vpop.f32.mrb[1].mxu0 }
 0x29b   : > { %v977_v13 = vpop.f32.mrb[2].mxu0 }
 0x29c   : > { %v4155_v14 = vpack.c.bf16 %v975_v11, %v975_v11  ;;  %v978_v15 = vadd.f32 %v2541_v9, %v977_v13  ;;  %v2646_v16 = vpop.f32.mrb[3].mxu0 }
 0x29e   : > { %996 = vrot.lane.b32.xlu0 %v4155_v14, %s3506_s23  ;;  %v4158_v17 = vpack.c.bf16 %v978_v15, %v978_v15 }
 0x2a2   : > { %1046 = vrot.lane.b32.xlu0 %v4158_v17, %s3506_s23  ;;  %s3512_s23 = smov 112  }
 0x2a6   : > { %1114 = vrot.lane.b32.xlu0 %v4155_v14, %s3507_s3 }
 0x2aa   : > { %1219 = vrot.lane.b32.xlu0 %v4155_v14, %s3508_s11 }
 0x2ae   : > { %1269 = vrot.lane.b32.xlu0 %v4158_v17, %s3508_s11  ;;  %s3514_s11 = smov 72  }
 0x2b2   : > { %1217 = vrot.lane.b32.xlu0 %v4155_v14, %s3509_s17 }
 0x2b6   : > { %1267 = vrot.lane.b32.xlu0 %v4158_v17, %s3509_s17  ;;  %s3515_s17 = smov 104  }
 0x2ba   : > { %1337 = vrot.lane.b32.xlu0 %v4155_v14, %s3510_s12 }
 0x310   : > { %v997_v18 = vpop.permute.xlu0 %996 }
 0x311   : > { %v1003_v19 = vsel %vm998_vm3, %v997_v18, 0 }
 0x312   : > { %2648 = vmatpush3.bf16.xpose.msra.mxu1 %v1003_v19 }
 0x313   : > { %2659 = vmatprep.subr.bf16.mxu1 %v3504_v4 }
 0x314   : > { %v1047_v20 = vpop.permute.xlu0 %1046 }
 0x315   : > { %v1052_v21 = vsel %vm998_vm3, %v1047_v20, 0 }
 0x316   : > { %2654 = vmatpush3.bf16.xpose.msra.mxu0 %v1052_v21 }
 0x317   : > { %2665 = vmatprep.subr.bf16.mxu0 %v3504_v4 }
 0x318   : > { %v1115_v22 = vpop.permute.xlu0 %1114 }
 0x319   : > { %v1121_v23 = vsel %vm1119_vm4, %v1115_v22, 0  ;;  %2650 = vmatmul.mubr.msk.bf16.vlgmr.msra.gmra.mrb[0].mxu1 %vm998_vm3, %v4155_v14 }
 0x31a   : > { %2660 = vmatpush3.bf16.msra.mxu1 %v1121_v23  ;;  %2661 = vmatprep.mubr.msk.bf16.mxu1 %vm3505_vm1, %v3504_v4 }
 0x31b   : > { %2671 = vmatprep.subr.bf16.mxu1 %v3504_v4 }
 0x31c   : > { %v1220_v38 = vpop.permute.xlu0 %1219 }
 0x31d   : > { %2656 = vmatmul.mubr.msk.bf16.vlgmr.msra.gmra.mrb[4].mxu0 %vm998_vm3, %v4158_v17  ;;  %v1225_v52 = vsel %vm998_vm3, %v1220_v38, 0 }
 0x31e   : > { %2667 = vmatprep.mubr.msk.bf16.mxu0 %vm3505_vm1, %v3504_v4 }
 0x320   : > { %v1270_v43 = vpop.permute.xlu0 %1269 }
 0x321   : > { %v1275_v55 = vsel %vm998_vm3, %v1270_v43, 0 }
 0x324   : > { %v1218_v48 = vpop.permute.xlu0 %1217 }
 0x328   : > { %v1268_v51 = vpop.permute.xlu0 %1267 }
 0x32c   : > { %v1338_v56 = vpop.permute.xlu0 %1337 }
 0x32d   : > { %v1343_v57 = vsel %vm1119_vm4, %v1338_v56, 0 }
 0x3ec   : > { %v1039_v25 = vpop.f32.mrb[0].mxu1 }
 0x3ed   : > { %v1040_v26 = vadd.f32 %v4183_v24, %v1039_v25  ;;  %v2651_v27 = vpop.f32.mrb[1].mxu1 }
 0x3ee   : > { %v1042_v28 = vpop.f32.mrb[2].mxu1 }
 0x3ef   : > { %v2652_v30 = vpop.f32.mrb[3].mxu1  ;;  %v1094_v31 = vsel %vm998_vm3, %v1040_v26, -inf }
 0x3f0   : > { %1095 = vmax.xlane.f32.xlu1 %v1094_v31  ;;  %v1088_v32 = vpop.f32.mrb[4].mxu0 }
 0x3f1   : > { %v1089_v33 = vadd.f32 %v4186_v29, %v1088_v32  ;;  %v2657_v34 = vpop.f32.mrb[5].mxu0 }
 0x3f2   : > { %v1091_v35 = vpop.f32.mrb[6].mxu0 }
 0x3f3   : > { %v2658_v36 = vpop.f32.mrb[7].mxu0  ;;  %v1097_v37 = vsel %vm998_vm3, %v1089_v33, -inf }
 0x3f4   : > { %1098 = vmax.xlane.f32.xlu1 %v1097_v37 }
 0x405   : > { %1163 = vrot.lane.b32.xlu1 %v4158_v17, %s3507_s3  ;;  %s3513_s3 = smov 48  }
 0x409   : > { %1385 = vrot.lane.b32.xlu1 %v4158_v17, %s3510_s12  ;;  %s3516_s12 = smov 40  }
 0x47d   : > { %v1096_v39 = vpop.xlane.xlu1 %1095 }
 0x47e   : > { %v1100_v40 = vsub.f32 %v1040_v26, %v1096_v39 }
 0x480   : > { %v1102_v41 = vmul.f32 1.442695, %v1100_v40 }
 0x481   : > { %v1099_v42 = vpop.xlane.xlu1 %1098 }
 0x482   : > { %2940 = vpow2.f32 %v1102_v41  ;;  %v1101_v44 = vsub.f32 %v1089_v33, %v1099_v42 }
 0x484   : > { %v1104_v45 = vmul.f32 1.442695, %v1101_v44 }
 0x485   : > { %v1164_v46 = vpop.permute.xlu1 %1163 }
 0x486   : > { %2942 = vpow2.f32 %v1104_v45  ;;  %v1169_v47 = vsel %vm1119_vm4, %v1164_v46, 0 }
 0x487   : > { %2666 = vmatpush3.bf16.msra.mxu0 %v1169_v47 }
 0x488   : > { %2677 = vmatprep.subr.bf16.mxu0 %v3504_v4 }
 0x489   : > { %v1386_v58 = vpop.permute.xlu1 %1385 }
 0x48a   : > { %v1391_v59 = vsel %vm1119_vm4, %v1386_v58, 0 }
 0x48c   : > { %v4197_v49 = vpop.eup %2940 }
 0x48d   : > { %v1112_v50 = vpack.c.bf16 %v4197_v49, %v4197_v49 }
 0x48f   : > { %2662 = vmatmul.mubr.msk.bf16.vlgmr.msra.gmra.mrb[4].mxu1 %vm998_vm3, %v1112_v50 }
 0x490   : > { %v4203_v53 = vpop.eup %2942  ;;  %2672 = vmatpush3.bf16.xpose.msra.mxu1 %v1225_v52  ;;  %2673 = vmatprep.mubr.msk.bf16.mxu1 %vm3505_vm1, %v3504_v4 }
 0x491   : > { %v1113_v54 = vpack.c.bf16 %v4203_v53, %v4203_v53  ;;  %2683 = vmatprep.subr.bf16.mxu1 %v3504_v4 }
 0x493   : > { %2668 = vmatmul.mubr.msk.bf16.vlgmr.msra.gmra.mrb[8].mxu0 %vm998_vm3, %v1113_v54 }
 0x494   : > { %2678 = vmatpush3.bf16.xpose.msra.mxu0 %v1275_v55  ;;  %2679 = vmatprep.mubr.msk.bf16.mxu0 %vm3505_vm1, %v3504_v4 }
 0x495   : > { %2689 = vmatprep.subr.bf16.mxu0 %v3504_v4 }
 0x497   : > { %2674 = vmatmul.mubr.msk.bf16.vlgmr.msra.gmra.mrb[8].mxu1 %vm998_vm3, %v1218_v48 }
 0x498   : > { %2684 = vmatpush3.bf16.msra.mxu1 %v1343_v57  ;;  %2685 = vmatprep.mubr.msk.bf16.mxu1 %vm3505_vm1, %v3504_v4 }
 0x499   : > { %2695 = vmatprep.subr.bf16.mxu1 %v3504_v4 }
 0x49b   : > { %2680 = vmatmul.mubr.msk.bf16.vlgmr.msra.gmra.mrb[12].mxu0 %vm998_vm3, %v1268_v51 }
 0x49c   : > { %2690 = vmatpush3.bf16.msra.mxu0 %v1391_v59  ;;  %2691 = vmatprep.mubr.msk.bf16.mxu0 %vm3505_vm1, %v3504_v4 }
 0x49d   : > { %2701 = vmatprep.subr.bf16.mxu0 %v3504_v4 }
 0x562   : > { %v4225_v60 = vpop.f32.mrb[4].mxu1 }
 0x563   : > { %v2663_v61 = vpop.f32.mrb[5].mxu1 }
 0x564   : > { %v1160_v62 = vpop.f32.mrb[6].mxu1 }
 0x565   : > { %v2664_v63 = vpop.f32.mrb[7].mxu1 }
 0x566   : > { %v4227_v0 = vpop.f32.mrb[8].mxu0 }
 0x567   : > { %v2669_v1 = vpop.f32.mrb[9].mxu0 }
 0x568   : > { %v1208_v2 = vpop.f32.mrb[10].mxu0 }
 0x569   : > { %v2670_v3 = vpop.f32.mrb[11].mxu0 }
 0x56a   : > { %v1261_v5 = vpop.f32.mrb[8].mxu1 }
 0x56b   : > { %v1262_v8 = vadd.f32 %v4183_v24, %v1261_v5  ;;  %v2675_v9 = vpop.f32.mrb[9].mxu1 }
 0x56c   : > { %v1264_v10 = vpop.f32.mrb[10].mxu1 }
 0x56d   : > { %v2676_v11 = vpop.f32.mrb[11].mxu1  ;;  %v1317_v12 = vsel %vm998_vm3, %v1262_v8, -inf }
 0x56e   : > { %1318 = vmax.xlane.f32.xlu1 %v1317_v12  ;;  %v1311_v13 = vpop.f32.mrb[12].mxu0 }
 0x56f   : > { %v1312_v15 = vadd.f32 %v4186_v29, %v1311_v13  ;;  %v2681_v16 = vpop.f32.mrb[13].mxu0 }
 0x570   : > { %v1314_v18 = vpop.f32.mrb[14].mxu0 }
 0x571   : > { %v2682_v19 = vpop.f32.mrb[15].mxu0  ;;  %v1320_v20 = vsel %vm998_vm3, %v1312_v15, -inf }
 0x572   : > { %1321 = vmax.xlane.f32.xlu0 %v1320_v20 }
 0x57f   : > { %1446 = vrot.lane.b32.xlu1 %v4155_v14, %s3511_s30 }
 0x583   : > { %1444 = vrot.lane.b32.xlu1 %v4155_v14, %s3512_s23 }
 0x587   : > { %1612 = vrot.lane.b32.xlu1 %v4158_v17, %s3513_s3 }
 0x588   : > { %1496 = vrot.lane.b32.xlu0 %v4158_v17, %s3511_s30  ;;  %s3517_s30 = smov 8  }
 0x58c   : > { %1494 = vrot.lane.b32.xlu0 %v4158_v17, %s3512_s23  ;;  %s3518_s23 = smov 16  }
 0x590   : > { %1564 = vrot.lane.b32.xlu0 %v4155_v14, %s3513_s3 }
 0x5fb   : > { %v1319_v21 = vpop.xlane.xlu1 %1318 }
 0x5fc   : > { %v1323_v22 = vsub.f32 %v1262_v8, %v1319_v21 }
 0x5fe   : > { %v1325_v23 = vmul.f32 1.442695, %v1323_v22 }
 0x5ff   : > { %v1322_v25 = vpop.xlane.xlu0 %1321  ;;  %v1447_v31 = vpop.permute.xlu1 %1446 }
 0x600   : > { %2944 = vpow2.f32 %v1325_v23  ;;  %v1324_v26 = vsub.f32 %v1312_v15, %v1322_v25  ;;  %v1452_v34 = vsel %vm998_vm3, %v1447_v31, 0 }
 0x602   : > { %v1327_v27 = vmul.f32 1.442695, %v1324_v26 }
 0x603   : > { %v1497_v28 = vpop.permute.xlu0 %1496  ;;  %v1445_v37 = vpop.permute.xlu1 %1444 }
 0x604   : > { %2946 = vpow2.f32 %v1327_v27  ;;  %v1502_v38 = vsel %vm998_vm3, %v1497_v28, 0 }
 0x607   : > { %v1495_v33 = vpop.permute.xlu0 %1494  ;;  %v1613_v41 = vpop.permute.xlu1 %1612 }
 0x608   : > { %v1618_v42 = vsel %vm1119_vm4, %v1613_v41, 0 }
 0x60a   : > { %v4239_v30 = vpop.eup %2944 }
 0x60b   : > { %v1335_v32 = vpack.c.bf16 %v4239_v30, %v4239_v30  ;;  %v1565_v39 = vpop.permute.xlu0 %1564 }
 0x60c   : > { %v1570_v40 = vsel %vm1119_vm4, %v1565_v39, 0 }
 0x60d   : > { %2686 = vmatmul.mubr.msk.bf16.vlgmr.msra.gmra.mrb[12].mxu1 %vm998_vm3, %v1335_v32 }
 0x60e   : > { %v4245_v35 = vpop.eup %2946  ;;  %2696 = vmatpush3.bf16.xpose.msra.mxu1 %v1452_v34  ;;  %2697 = vmatprep.mubr.msk.bf16.mxu1 %vm3505_vm1, %v3504_v4 }
 0x60f   : > { %v1336_v36 = vpack.c.bf16 %v4245_v35, %v4245_v35  ;;  %2707 = vmatprep.subr.bf16.mxu1 %v3504_v4 }
 0x611   : > { %2692 = vmatmul.mubr.msk.bf16.vlgmr.msra.gmra.mrb[16].mxu0 %vm998_vm3, %v1336_v36 }
 0x612   : > { %2702 = vmatpush3.bf16.xpose.msra.mxu0 %v1502_v38  ;;  %2703 = vmatprep.mubr.msk.bf16.mxu0 %vm3505_vm1, %v3504_v4 }
 0x613   : > { %2713 = vmatprep.subr.bf16.mxu0 %v3504_v4 }
 0x615   : > { %2698 = vmatmul.mubr.msk.bf16.vlgmr.msra.gmra.mrb[16].mxu1 %vm998_vm3, %v1445_v37 }
 0x616   : > { %2708 = vmatpush3.bf16.msra.mxu1 %v1570_v40  ;;  %2709 = vmatprep.mubr.msk.bf16.mxu1 %vm3505_vm1, %v3504_v4 }
 0x617   : > { %2719 = vmatprep.subr.bf16.mxu1 %v3504_v4 }
 0x619   : > { %2704 = vmatmul.mubr.msk.bf16.vlgmr.msra.gmra.mrb[20].mxu0 %vm998_vm3, %v1495_v33 }
 0x61a   : > { %2714 = vmatpush3.bf16.msra.mxu0 %v1618_v42  ;;  %2715 = vmatprep.mubr.msk.bf16.mxu0 %vm3505_vm1, %v3504_v4 }
 0x61b   : > { %2725 = vmatprep.subr.bf16.mxu0 %v3504_v4 }
 0x6e0   : > { %v4267_v43 = vpop.f32.mrb[12].mxu1 }
 0x6e1   : > { %v2687_v44 = vpop.f32.mrb[13].mxu1 }
 0x6e2   : > { %v1382_v45 = vpop.f32.mrb[14].mxu1 }
 0x6e3   : > { %v2688_v46 = vpop.f32.mrb[15].mxu1 }
 0x6e4   : > { %v4269_v47 = vpop.f32.mrb[16].mxu0 }
 0x6e5   : > { %v2693_v48 = vpop.f32.mrb[17].mxu0 }
 0x6e6   : > { %v1430_v50 = vpop.f32.mrb[18].mxu0 }
 0x6e7   : > { %v2694_v51 = vpop.f32.mrb[19].mxu0 }
 0x6e8   : > { %v1488_v52 = vpop.f32.mrb[16].mxu1 }
 0x6e9   : > { %v1489_v54 = vadd.f32 %v4183_v24, %v1488_v52  ;;  %v2699_v55 = vpop.f32.mrb[17].mxu1 }
 0x6ea   : > { %v1491_v56 = vpop.f32.mrb[18].mxu1 }
 0x6eb   : > { %v2700_v57 = vpop.f32.mrb[19].mxu1  ;;  %v1544_v58 = vsel %vm998_vm3, %v1489_v54, -inf }
 0x6ec   : > { %1545 = vmax.xlane.f32.xlu1 %v1544_v58  ;;  %v1538_v59 = vpop.f32.mrb[20].mxu0 }
 0x6ed   : > { %v1539_v61 = vadd.f32 %v4186_v29, %v1538_v59  ;;  %v2705_v62 = vpop.f32.mrb[21].mxu0 }
 0x6ee   : > { %v1541_v63 = vpop.f32.mrb[22].mxu0 }
 0x6ef   : > { %v2706_v1 = vpop.f32.mrb[23].mxu0  ;;  %v1547_v2 = vsel %vm998_vm3, %v1539_v61, -inf }
 0x6f0   : > { %1548 = vmax.xlane.f32.xlu0 %v1547_v2  ;;  %v1106_v2 = vsel %vm998_vm3, %v4197_v49, 0.0 }
 0x6fd   : > { %1673 = vrot.lane.b32.xlu1 %v4155_v14, %s3514_s11 }
 0x701   : > { %1671 = vrot.lane.b32.xlu1 %v4155_v14, %s3515_s17 }
 0x706   : > { %1723 = vrot.lane.b32.xlu0 %v4158_v17, %s3514_s11 }
 0x70a   : > { %1721 = vrot.lane.b32.xlu0 %v4158_v17, %s3515_s17 }
 0x779   : > { %v1546_v3 = vpop.xlane.xlu1 %1545 }
 0x77a   : > { %v1550_v5 = vsub.f32 %v1489_v54, %v1546_v3 }
 0x77c   : > { %v1552_v8 = vmul.f32 1.442695, %v1550_v5 }
 0x77d   : > { %v1549_v9 = vpop.xlane.xlu0 %1548  ;;  %v1674_v13 = vpop.permute.xlu1 %1673 }
 0x77e   : > { %2948 = vpow2.f32 %v1552_v8  ;;  %v1551_v10 = vsub.f32 %v1539_v61, %v1549_v9  ;;  %v1679_v16 = vsel %vm998_vm3, %v1674_v13, 0  ;;  %v1109_v8 = vsel %vm998_vm3, %v4203_v53, 0.0 }
 0x780   : > { %v1554_v11 = vmul.f32 1.442695, %v1551_v10 }
 0x781   : > { %v1724_v19 = vpop.permute.xlu0 %1723  ;;  %v1672_v22 = vpop.permute.xlu1 %1671 }
 0x782   : > { %2950 = vpow2.f32 %v1554_v11  ;;  %v1729_v21 = vsel %vm998_vm3, %v1724_v19, 0 }
 0x785   : > { %v1722_v23 = vpop.permute.xlu0 %1721 }
 0x788   : > { %v2949_v12 = vpop.eup %2948 }
 0x789   : > { %v1562_v15 = vpack.c.bf16 %v2949_v12, %v2949_v12  ;;  %v1556_v52 = vsel %vm998_vm3, %v2949_v12, 0.0 }
 0x78b   : > { %2710 = vmatmul.mubr.msk.bf16.vlgmr.msra.gmra.mrb[20].mxu1 %vm998_vm3, %v1562_v15 }
 0x78c   : > { %v2951_v18 = vpop.eup %2950  ;;  %2720 = vmatpush3.bf16.xpose.msra.mxu1 %v1679_v16  ;;  %2721 = vmatprep.mubr.msk.bf16.mxu1 %vm3505_vm1, %v3504_v4 }
 0x78d   : > { %v1563_v20 = vpack.c.bf16 %v2951_v18, %v2951_v18  ;;  %2731 = vmatprep.subr.bf16.mxu1 %v3504_v4  ;;  %v1559_v51 = vsel %vm998_vm3, %v2951_v18, 0.0 }
 0x78f   : > { %2716 = vmatmul.mubr.msk.bf16.vlgmr.msra.gmra.mrb[24].mxu0 %vm998_vm3, %v1563_v20 }
 0x790   : > { %2726 = vmatpush3.bf16.xpose.msra.mxu0 %v1729_v21  ;;  %2727 = vmatprep.mubr.msk.bf16.mxu0 %vm3505_vm1, %v3504_v4 }
 0x791   : > { %2737 = vmatprep.subr.bf16.mxu0 %v3504_v4 }
 0x793   : > { %2722 = vmatmul.mubr.msk.bf16.vlgmr.msra.gmra.mrb[24].mxu1 %vm998_vm3, %v1672_v22 }
 0x794   : > { %2733 = vmatprep.mubr.msk.bf16.mxu1 %vm3505_vm1, %v3504_v4 }
 0x797   : > { %2728 = vmatmul.mubr.msk.bf16.vlgmr.msra.gmra.mrb[28].mxu0 %vm998_vm3, %v1722_v23 }
 0x798   : > { %2739 = vmatprep.mubr.msk.bf16.mxu0 %vm3505_vm1, %v3504_v4 }
 0x85e   : > { %v4295_v25 = vpop.f32.mrb[20].mxu1 }
 0x85f   : > { %v2711_v26 = vpop.f32.mrb[21].mxu1 }
 0x860   : > { %v1609_v27 = vpop.f32.mrb[22].mxu1 }
 0x861   : > { %v2712_v28 = vpop.f32.mrb[23].mxu1 }
 0x862   : > { %v4297_v31 = vpop.f32.mrb[24].mxu0 }
 0x863   : > { %v2717_v32 = vpop.f32.mrb[25].mxu0 }
 0x864   : > { %v1657_v33 = vpop.f32.mrb[26].mxu0 }
 0x865   : > { %v2718_v34 = vpop.f32.mrb[27].mxu0 }
 0x866   : > { %v1715_v36 = vpop.f32.mrb[24].mxu1 }
 0x867   : > { %v1716_v37 = vadd.f32 %v4183_v24, %v1715_v36  ;;  %v2723_v38 = vpop.f32.mrb[25].mxu1  ;;  %v1329_v24 = vsel %vm998_vm3, %v4239_v30, 0.0  ;;  %v2932_v36 = vld [vmem:[%s732_s1] sm:$0xff]  }
 0x868   : > { %v1718_v39 = vpop.f32.mrb[26].mxu1 }
 0x869   : > { %v2724_v40 = vpop.f32.mrb[27].mxu1  ;;  %v1771_v41 = vsel %vm998_vm3, %v1716_v37, -inf }
 0x86a   : > { %1772 = vmax.xlane.f32.xlu1 %v1771_v41  ;;  %v1765_v42 = vpop.f32.mrb[28].mxu0 }
 0x86b   : > { %v1766_v44 = vadd.f32 %v4186_v29, %v1765_v42  ;;  %v2729_v45 = vpop.f32.mrb[29].mxu0  ;;  %v1332_v29 = vsel %vm998_vm3, %v4245_v35, 0.0 }
 0x86c   : > { %v1768_v46 = vpop.f32.mrb[30].mxu0 }
 0x86d   : > { %v2730_v48 = vpop.f32.mrb[31].mxu0  ;;  %v1774_v50 = vsel %vm998_vm3, %v1766_v44, -inf }
 0x86e   : > { %1775 = vmax.xlane.f32.xlu0 %v1774_v50 }
 0x87b   : > { %1839 = vrot.lane.b32.xlu1 %v4158_v17, %s3516_s12 }
 0x884   : > { %1791 = vrot.lane.b32.xlu0 %v4155_v14, %s3516_s12 }
 0x89f   : > { %1330 = vadd.xlane.f32.xlu1 %v1329_v24 }
 0x8a3   : > { %1560 = vadd.xlane.f32.xlu1 %v1559_v51  ;;  %1333 = vadd.xlane.f32.xlu0 %v1332_v29 }
 0x8a7   : > { %1557 = vadd.xlane.f32.xlu0 %v1556_v52  ;;  %v2563_v52 = vld [vmem:[%s740_s18] ss:$0 sm:$0xff]  ;;  %s3520_s18 = smov [#allocation20]  }
 0x8f7   : > { %v1773_v54 = vpop.xlane.xlu1 %1772 }
 0x8f8   : > { %v1777_v55 = vsub.f32 %v1716_v37, %v1773_v54  ;;  %v2933_v37 = vld [vmem:[%s732_s1 + $0x8] sm:$0xff]   ;;  %s3519_s1 = smov 24  }
 0x8fa   : > { %v1779_v56 = vmul.f32 1.442695, %v1777_v55 }
 0x8fb   : > { %v1840_v17 = vpop.permute.xlu1 %1839  ;;  %v1776_v57 = vpop.xlane.xlu0 %1775 }
 0x8fc   : > { %2952 = vpow2.f32 %v1779_v56  ;;  %v1845_v14 = vsel %vm1119_vm4, %v1840_v17, 0  ;;  %v1778_v30 = vsub.f32 %v1766_v44, %v1776_v57 }
 0x8fd   : > { %2738 = vmatpush3.bf16.msra.mxu0 %v1845_v14 }
 0x8fe   : > { %v1781_v58 = vmul.f32 1.442695, %v1778_v30  ;;  %2751 = vmatprep.subr.bf16.mxu0 %v3504_v4 }
 0x8ff   : > { %v1792_v59 = vpop.permute.xlu0 %1791 }
 0x900   : > { %2954 = vpow2.f32 %v1781_v58  ;;  %v1797_v35 = vsel %vm1119_vm4, %v1792_v59, 0 }
 0x901   : > { %2732 = vmatpush3.bf16.msra.mxu1 %v1797_v35 }
 0x902   : > { %2743 = vmatprep.subr.bf16.mxu1 %v3504_v4 }
 0x906   : > { %v2953_v61 = vpop.eup %2952 }
 0x907   : > { %v1783_v62 = vsel %vm998_vm3, %v2953_v61, 0.0  ;;  %v1789_v63 = vpack.c.bf16 %v2953_v61, %v2953_v61 }
 0x908   : > { %1784 = vadd.xlane.f32.xlu0 %v1783_v62 }
 0x909   : > { %2734 = vmatmul.mubr.msk.bf16.vlgmr.msra.gmra.mrb[28].mxu1 %vm998_vm3, %v1789_v63 }
 0x90a   : > { %v2955_v1 = vpop.eup %2954  ;;  %2747 = vmatprep.mubr.msk.bf16.mxu1 %vm3505_vm1, %v3504_v4  ;;  %2744 = vmatpush3.bf16.msra.mxu1 %v2932_v36 }
 0x90b   : > { %v1786_v3 = vsel %vm998_vm3, %v2955_v1, 0.0  ;;  %v1790_v5 = vpack.c.bf16 %v2955_v1, %v2955_v1  ;;  %2745 = vmatprep.subr.bf16.mxu1 %v3504_v4 }
 0x90c   : > { %1107 = vadd.xlane.f32.xlu0 %v1106_v2  ;;  %1787 = vadd.xlane.f32.xlu1 %v1786_v3 }
 0x90d   : > { %2740 = vmatmul.mubr.msk.bf16.vlgmr.msra.gmra.mrb[32].mxu0 %vm998_vm3, %v1790_v5 }
 0x90e   : > { %2755 = vmatprep.mubr.msk.bf16.mxu0 %vm3505_vm1, %v3504_v4  ;;  %2746 = vmatpush3.bf16.msra.mxu1 %v2933_v37 }
 0x90f   : > { %2759 = vmatprep.subr.bf16.mxu1 %v3504_v4 }
 0x910   : > { %1110 = vadd.xlane.f32.xlu1 %v1109_v8 }
 0x92c   : > { %v1331_v9 = vpop.xlane.xlu1 %1330 }
 0x92d   : > { %2956 = vrcp.f32 %v1331_v9  ;;  %v2934_v9 = vld [vmem:[%s765_s27] sm:$0xff]  }
 0x92e   : > { %2752 = vmatpush3.bf16.msra.mxu0 %v2934_v9  ;;  %v2580_v9 = vld [vmem:[%s806_s29] ss:$0 sm:$0xff] }
 0x92f   : > { %2753 = vmatprep.subr.bf16.mxu0 %v3504_v4 }
 0x930   : > { %v1561_v10 = vpop.xlane.xlu1 %1560  ;;  %v1334_v11 = vpop.xlane.xlu0 %1333 }
 0x931   : > { %2958 = vrcp.f32 %v1334_v11  ;;  %v2936_v11 = vld [vmem:[%s4130_s19] sm:$0xff]  }
 0x932   : > { %2960 = vrcp.f32 %v1561_v10  ;;  %v2935_v10 = vld [vmem:[%s765_s27 + $0x8] sm:$0xff]  }
 0x933   : > { %2754 = vmatpush3.bf16.msra.mxu0 %v2935_v10 }
 0x934   : > { %v1558_v49 = vpop.xlane.xlu0 %1557 }
 0x935   : > { %2962 = vrcp.f32 %v1558_v49  ;;  %v2937_v49 = vld [vmem:[%s4130_s19 + $0x8] sm:$0xff]  }
 0x937   : > { %v2957_v12 = vpop.eup %2956 }
 0x938   : > { %v1435_v16 = vmul.f32 %v2957_v12, %v4267_v43 }
 0x93b   : > { %v2959_v13 = vpop.eup %2958 }
 0x93c   : > { %v2961_v15 = vpop.eup %2960  ;;  %v1436_v18 = vmul.f32 %v2959_v13, %v4269_v47 }
 0x93d   : > { %v1663_v21 = vmul.f32 %v2961_v15, %v4297_v31 }
 0x93e   : > { %v1437_v20 = vpack.c.bf16 %v1436_v18, %v1435_v16 }
 0x93f   : > { %v2963_v19 = vpop.eup %2962 }
 0x940   : > { %v1662_v53 = vmul.f32 %v2963_v19, %v4295_v25  ;;  %1439 = vrot.lane.b32.xlu0 %v1437_v20, %s3517_s30 }
 0x942   : > { %v1664_v22 = vpack.c.bf16 %v1663_v21, %v1662_v53  ;;  %v2567_v21 = vld [vmem:[%s748_s22] ss:$0 sm:$0xff]  ;;  %s2225_s22 = sshll.u32 %s3520_s18, 4  ;;  %s2226_s22 = int_to_ptr.vmem [resolvable:$true] %s2225_s22 }
 0x943   : > { %p3403_p13 = scmp.lt.s32.totalorder %s2226_s22, %s2226_s22 }
 0x944   : > { %1666 = vrot.lane.b32.xlu1 %v1664_v22, %s3518_s23 }
 0x995   : > { %v1785_v23 = vpop.xlane.xlu0 %1784 }
 0x999   : > { %v1788_v26 = vpop.xlane.xlu1 %1787  ;;  %v1108_v27 = vpop.xlane.xlu0 %1107 }
 0x99a   : > { %2964 = vrcp.f32 %v1108_v27  ;;  %v2568_v27 = vld [vmem:[%s756_s28] ss:$0 sm:$0xff]  ;;  %s3396_s28 = scalar_lea.vmem %s2226_s22, 256 }
 0x99b   : > { %p3397_p0 = scmp.ne.s32.totalorder %s2226_s22, %s3396_s28  ;;  %p3404_p3 = scmp.lt.s32.totalorder %s3396_s28, %s3396_s28 }
 0x99d   : > { %v1111_v28 = vpop.xlane.xlu1 %1110  ;;  %p3398_p2 = pnand %p3397_p0, %p2856_p8  ;;  %p3405_p6 = por %p3404_p3, %p3403_p13 }
 0x99e   : > { %2966 = vrcp.f32 %v1111_v28 }
 0x99f   : > { %2968 = vrcp.f32 %v1785_v23  ;;  %p3399_p4 = pneg %p3398_p2 }
 0x9a0   : > { %2970 = vrcp.f32 %v1788_v26 }
 0x9a1   : > { %p3406_p11 = pnand %p3405_p6, %p3399_p4 }
 0x9a4   : > { %v2965_v43 = vpop.eup %2964 }
 0x9a5   : > { %v1213_v25 = vmul.f32 %v2965_v43, %v4225_v60 }
 0x9a8   : > { %v2967_v47 = vpop.eup %2966 }
 0x9a9   : > { %v1214_v31 = vmul.f32 %v2967_v47, %v4227_v0  ;;  %v2969_v39 = vpop.eup %2968 }
 0x9aa   : > { %v2971_v41 = vpop.eup %2970 }
 0x9ab   : > { %v1215_v32 = vpack.c.bf16 %v1214_v31, %v1213_v25  ;;  %v2938_v31 = vld [vmem:[%s4130_s19 + $0x10] sm:$0xff]  }
 0x9ad   : > { %1216 = vst.msk [vmem:[#allocation2] sm:$0xff] %vm998_vm3, %v1215_v32  ;;  %v2939_v32 = vld [vmem:[%s4130_s19 + $0x18] sm:$0xff]  }
 0x9b2   : > { %v1440_v33 = vpop.permute.xlu0 %1439 }
 0x9b3   : > { %1443 = vst.msk [vmem:[#allocation2] sm:$0xff] %vm1442_vm5, %v1440_v33  ;;  %v2569_v33 = vld [vmem:[%s773_s16] ss:$0 sm:$0xff] }
 0x9b6   : > { %v1667_v34 = vpop.permute.xlu1 %1666 }
 0x9b7   : > { %1670 = vst.msk [vmem:[#allocation2] sm:$0xff] %vm1669_vm6, %v1667_v34 }
 0x9dc   : > { %v1833_v60 = vpop.f32.mrb[28].mxu1 }
 0x9dd   : > { %v2735_v0 = vpop.f32.mrb[29].mxu1  ;;  %v1889_v44 = vmul.f32 %v2969_v39, %v1833_v60 }
 0x9de   : > { %v1836_v38 = vpop.f32.mrb[30].mxu1 }
 0x9df   : > { %v2736_v40 = vpop.f32.mrb[31].mxu1 }
 0x9e0   : > { %v1881_v42 = vpop.f32.mrb[32].mxu0 }
 0x9e1   : > { %v1890_v45 = vmul.f32 %v2971_v41, %v1881_v42  ;;  %v2741_v46 = vpop.f32.mrb[33].mxu0  ;;  %v2573_v42 = vld [vmem:[%s790_s26] ss:$0 sm:$0xff] }
 0x9e2   : > { %v1884_v48 = vpop.f32.mrb[34].mxu0 }
 0x9e3   : > { %v1891_v50 = vpack.c.bf16 %v1890_v45, %v1889_v44  ;;  %v2742_v24 = vpop.f32.mrb[35].mxu0 }
 0x9e5   : > { %1893 = vrot.lane.b32.xlu1 %v1891_v50, %s3519_s1 }
 0xa57   : > { %v1894_v51 = vpop.permute.xlu1 %1893 }
 0xa58   : > { %1897 = vst.msk [vmem:[#allocation2] sm:$0xff] %vm1896_vm7, %v1894_v51 }
 0xa5f   : > { %v1898_v29 = vld [vmem:[#allocation2] sm:$0xff] }
 0xa60   : > { %2748 = vmatmul.mubr.msk.bf16.vlgmr.msra.gmra.mrb[32].mxu1 %vm936_vm2, %v1898_v29 }
 0xa61   : > { %2767 = vmatprep.mubr.msk.bf16.mxu1 %vm3505_vm1, %v3504_v4  ;;  %2760 = vmatpush3.bf16.msra.mxu1 %v2936_v11 }
 0xa62   : > { %2761 = vmatprep.subr.bf16.mxu1 %v3504_v4 }
 0xa65   : > { %2762 = vmatpush3.bf16.msra.mxu1 %v2937_v49 }
 0xa66   : > { %2763 = vmatprep.subr.bf16.mxu1 %v3504_v4 }
 0xa69   : > { %2764 = vmatpush3.bf16.msra.mxu1 %v2938_v31 }
 0xa6a   : > { %2765 = vmatprep.subr.bf16.mxu1 %v3504_v4 }
 0xa6d   : > { %2766 = vmatpush3.bf16.msra.mxu1 %v2939_v32 }
 0xb33   : > { %v1959_v54 = vpop.f32.mrb[32].mxu1 }
 0xb34   : > { %v1960_v55 = vadd.f32 %v2563_v52, %v1959_v54  ;;  %v2749_v56 = vpop.f32.mrb[33].mxu1 }
 0xb35   : > { %v1962_v17 = vpop.f32.mrb[34].mxu1 }
 0xb36   : > { %v1963_v57 = vadd.f32 %v2563_v52, %v1962_v17  ;;  %v2750_v14 = vpop.f32.mrb[35].mxu1  ;;  %v1966_v30 = vadd.f32 %v1960_v55, %v4140_v6 }
 0xb38   : > { %v1970_v58 = vsel %vm936_vm2, %v1966_v30, 0.0  ;;  %v1967_v59 = vadd.f32 %v1963_v57, %v4142_v7 }
 0xb39   : > { %1971 = vadd.xlane.f32.xlu0 %v1970_v58 }
 0xb3a   : > { %v1973_v35 = vsel %vm936_vm2, %v1967_v59, 0.0 }
 0xb3b   : > { %1974 = vadd.xlane.f32.xlu1 %v1973_v35 }
 0xbc6   : > { %v1972_v61 = vpop.xlane.xlu0 %1971 }
 0xbc7   : > { %v1977_v62 = vmul.f32 0.03125, %v1972_v61 }
 0xbc8   : > { %v1975_v63 = vpop.xlane.xlu1 %1974 }
 0xbc9   : > { %v1979_v1 = vsub.f32 %v1966_v30, %v1977_v62  ;;  %v1978_v2 = vmul.f32 0.03125, %v1975_v63 }
 0xbcb   : > { %v1980_v3 = vsub.f32 %v1967_v59, %v1978_v2  ;;  %v1981_v5 = vmul.f32 %v1979_v1, %v1979_v1 }
 0xbcd   : > { %v1983_v6 = vsel %vm936_vm2, %v1981_v5, 0.0  ;;  %v1982_v8 = vmul.f32 %v1980_v3, %v1980_v3 }
 0xbce   : > { %1984 = vadd.xlane.f32.xlu0 %v1983_v6  ;;  %v2579_v6 = vld [vmem:[%s798_s21] ss:$0 sm:$0xff] }
 0xbcf   : > { %v1986_v7 = vsel %vm936_vm2, %v1982_v8, 0.0 }
 0xbd2   : > { %1987 = vadd.xlane.f32.xlu0 %v1986_v7 }
 0xc5b   : > { %v1985_v12 = vpop.xlane.xlu0 %1984 }
 0xc5c   : > { %v1989_v13 = vmul.f32 0.03125, %v1985_v12 }
 0xc5e   : > { %v1991_v15 = vadd.f32 1e-05, %v1989_v13 }
 0xc5f   : > { %v1988_v16 = vpop.xlane.xlu0 %1987 }
 0xc60   : > { %2972 = vrsqrt.f32 %v1991_v15  ;;  %v1990_v18 = vmul.f32 0.03125, %v1988_v16 }
 0xc62   : > { %v1992_v19 = vadd.f32 1e-05, %v1990_v18 }
 0xc64   : > { %2974 = vrsqrt.f32 %v1992_v19 }
 0xc6a   : > { %v2973_v20 = vpop.eup %2972 }
 0xc6b   : > { %v1995_v53 = vmul.f32 %v2973_v20, %v1979_v1 }
 0xc6d   : > { %v2003_v23 = vmul.f32 %v2567_v21, %v1995_v53 }
 0xc6e   : > { %v2975_v22 = vpop.eup %2974 }
 0xc6f   : > { %v1996_v26 = vmul.f32 %v2975_v22, %v1980_v3  ;;  %v2011_v43 = vadd.f32 %v2568_v27, %v2003_v23 }
 0xc71   : > { %v2004_v28 = vmul.f32 %v2567_v21, %v1996_v26 }
 0xc73   : > { %v2012_v47 = vadd.f32 %v2568_v27, %v2004_v28 }
 0xc75   : > { %v2013_v25 = vpack.c.bf16 %v2012_v47, %v2011_v43 }
 0xc77   : > { %2756 = vmatmul.mubr.msk.bf16.vlgmr.msra.gmra.mrb[36].mxu0 %vm936_vm2, %v2013_v25 }
 0xd4a   : > { %v2074_v34 = vpop.f32.mrb[36].mxu0 }
 0xd4b   : > { %v2075_v36 = vadd.f32 %v2569_v33, %v2074_v34  ;;  %v2757_v37 = vpop.f32.mrb[37].mxu0 }
 0xd4c   : > { %v2077_v60 = vpop.f32.mrb[38].mxu0 }
 0xd4d   : > { %v2078_v0 = vadd.f32 %v2569_v33, %v2077_v60  ;;  %v2758_v38 = vpop.f32.mrb[39].mxu0  ;;  %v2081_v39 = vmax.f32 %v2075_v36, 0.0 }
 0xd4f   : > { %v2082_v40 = vmax.f32 %v2078_v0, 0.0 }
 0xd51   : > { %v2083_v41 = vpack.c.bf16 %v2082_v40, %v2081_v39 }
 0xd53   : > { %2768 = vmatmul.mubr.msk.bf16.vlgmr.msra.gmra.mrb[36].mxu1 %vm2123_vm8, %v2083_v41 }
 0xe26   : > { %v2161_v44 = vpop.f32.mrb[36].mxu1 }
 0xe27   : > { %v2162_v45 = vadd.f32 %v2573_v42, %v2161_v44  ;;  %v2769_v4 = vpop.f32.mrb[37].mxu1 }
 0xe28   : > { %v2164_v46 = vpop.f32.mrb[38].mxu1 }
 0xe29   : > { %v2165_v48 = vadd.f32 %v2573_v42, %v2164_v46  ;;  %v2770_v50 = vpop.f32.mrb[39].mxu1  ;;  %v2168_v24 = vadd.f32 %v2162_v45, %v2011_v43 }
 0xe2b   : > { %v2172_v51 = vsel %vm936_vm2, %v2168_v24, 0.0  ;;  %v2169_v29 = vadd.f32 %v2165_v48, %v2012_v47 }
 0xe2c   : > { %2173 = vadd.xlane.f32.xlu1 %v2172_v51 }
 0xe2d   : > { %v2175_v52 = vsel %vm936_vm2, %v2169_v29, 0.0 }
 0xe2e   : > { %2176 = vadd.xlane.f32.xlu0 %v2175_v52 }
 0xeb9   : > { %v2174_v54 = vpop.xlane.xlu1 %2173 }
 0xeba   : > { %v2178_v55 = vmul.f32 0.03125, %v2174_v54 }
 0xebb   : > { %v2177_v56 = vpop.xlane.xlu0 %2176 }
 0xebc   : > { %v2180_v17 = vsub.f32 %v2168_v24, %v2178_v55  ;;  %v2179_v57 = vmul.f32 0.03125, %v2177_v56 }
 0xebe   : > { %v2181_v14 = vsub.f32 %v2169_v29, %v2179_v57  ;;  %v2182_v30 = vmul.f32 %v2180_v17, %v2180_v17 }
 0xec0   : > { %v2184_v58 = vsel %vm936_vm2, %v2182_v30, 0.0  ;;  %v2183_v59 = vmul.f32 %v2181_v14, %v2181_v14 }
 0xec1   : > { %2185 = vadd.xlane.f32.xlu1 %v2184_v58 }
 0xec2   : > { %v2187_v35 = vsel %vm936_vm2, %v2183_v59, 0.0 }
 0xec3   : > { %2188 = vadd.xlane.f32.xlu0 %v2187_v35 }
 0xf4e   : > { %v2186_v61 = vpop.xlane.xlu1 %2185 }
 0xf4f   : > { %v2190_v62 = vmul.f32 0.03125, %v2186_v61 }
 0xf50   : > { %v2189_v63 = vpop.xlane.xlu0 %2188 }
 0xf51   : > { %v2192_v1 = vadd.f32 1e-05, %v2190_v62  ;;  %v2191_v2 = vmul.f32 0.03125, %v2189_v63 }
 0xf53   : > { %2976 = vrsqrt.f32 %v2192_v1  ;;  %v2193_v3 = vadd.f32 1e-05, %v2191_v2 }
 0xf55   : > { %2978 = vrsqrt.f32 %v2193_v3 }
 0xf5d   : > { %v2977_v5 = vpop.eup %2976 }
 0xf5e   : > { %v2196_v8 = vmul.f32 %v2977_v5, %v2180_v17 }
 0xf5f   : > { %v2979_v7 = vpop.eup %2978 }
 0xf60   : > { %v2204_v10 = vmul.f32 %v2579_v6, %v2196_v8  ;;  %v2197_v11 = vmul.f32 %v2979_v7, %v2181_v14 }
 0xf62   : > { %v2205_v49 = vmul.f32 %v2579_v6, %v2197_v11  ;;  %v2212_v12 = vadd.f32 %v2580_v9, %v2204_v10 }
 0xf64   : > { %v2213_v13 = vadd.f32 %v2580_v9, %v2205_v49  ;;  %2214 = vst.msk [vmem:[#allocation20] sm:$0xff] %vm936_vm2, %v2212_v12 }
 0xf66   : > { %2215 = vst.msk [vmem:[#allocation20 + $0x8] sm:$0xff] %vm936_vm2, %v2213_v13 }
 0xf67   : > { %3409 = shalt.err (!%p3406_p11)
}
 0xf68   : > { %s4540_s16 = sld [smem:[#allocation42_spill]] }
 0xf6e   : > { %s4541_s19 = smov %s4540_s16  ;;  %s3410_s26 = scalar_lea.hbm %s4540_s16, 256 }
 0xf6f   : > { %p3411_p5 = scmp.ne.s32.totalorder %s4541_s19, %s3410_s26  ;;  %p3416_p1 = scmp.lt.u32.totalorder %s3410_s26, %s4541_s19 }
 0xf71   : > { %p3412_p10 = pnand %p3411_p5, %p2856_p8 }
 0xf73   : > { %p3413_p7 = pneg %p3412_p10 }
 0xf75   : > { %p3418_p9 = pnand %p3416_p1, %p3413_p7 }
 0xf77   : > { %3421 = shalt.err (!%p3418_p9)
}
 0xf78   : > { %s3521_s17 = smov 128  }
 0xf79   : > { %2804 = dma.vmem_to_hbm [thread:$0]  (%p2856_p8), %s2226_s22, 256, %s4541_s19, [#allocation5], %s3521_s17, %s3521_s17, %s3517_s30  }
 0xf7a   : > { %3459 = dma.done.wait (%p2856_p8), [#allocation5], 256  }
 0xf7b   : > { %3461 = vsyncadd (%p2856_p8), [#allocation5], 4294967040 }
 0xf7c PF: > { %s4542_s1 = sld [smem:[#allocation28_spill]]  ;;  %s4543_s29 = sld [smem:[#allocation25_spill]] }
 0xf7d   : > { %s4544_s16 = sld [smem:[#allocation27_spill]]  ;;  %s4545_s17 = sld [smem:[#allocation33_spill]] }
 0xf7e   : > { %s4546_s30 = smov %s3472_s15  ;;  %s4547_s15 = smov %s3774_s13 }
 0xf82   : > { %s27_s18 = sadd.s32 1, %s4542_s1  }
 0xf83   : > { %p24_p12 = scmp.ge.s32.totalorder %s27_s18, 4  }
 0xf85   :  { %26 = sbr.rel (!%p24_p12) target bundleno = 15 (0xf), region = 248 }
 0xf8c   :  { %2241 = vsyncpa [#allocation4], 1 }
 0xf8d   :  { %2243 = vsyncpa [#allocation4 + $0x1], 1 }
 0xf8e   :  { %2244 = vsyncpa [#allocation7], 1 }
 0xf8f   :  { %2245 = vsyncpa [#allocation5], 1 }
 0xf90   :  { %2247 = vsyncpa [#allocation5 + $0x1], 1 }

</bundles_post_ra>
